<compile_context>
chip_gen: v5e
topology: v5e:2x2
jax: 0.10.0
libtpu: 0.0.40
codegen_flags: <defaults>
</compile_context>

<pallas_src>
import jax
import jax.numpy as jnp
from jax.experimental import pallas as pl
from jax.experimental.pallas import tpu as pltpu

B, T, I = 2, 8, 4        # batch (nseries), seq_len, input_size
Bp = 8                   # batch padded to a full sublane tile
H = 32                   # hidden_size
A = 2                    # NormalDistributionLoss.distribution_arguments == [loc, scale]
EPS = 1e-10


def deepar_kernel(x_ref, w_ih_t_ref, w_hh_t_ref, b_ref, wp_ref, bp_ref,
                  out_ref, hn_ref, cn_ref, hs_ref):
    # x_ref: (T*Bp, I)  time-major, zero-padded & flattened by the wrapper
    x = x_ref[...]
    w_hh_t = w_hh_t_ref[...]        # (H, 4H)   g-gate columns pre-scaled by 2

    # ---- _TSScaler(normalize=True): (x - mean) / (sqrt(std_pop) + eps), dim=-1 (== I axis)
    mean = jnp.mean(x, axis=-1, keepdims=True)
    var = jnp.mean((x - mean) ** 2, axis=-1, keepdims=True)     # unbiased=False
    factors = jnp.sqrt(jnp.sqrt(var)) + EPS                     # sqrt(std) + eps (faithful to PyTorch)
    xs = (x - mean) / factors                                   # (T*Bp, I)

    # ---- Input contribution to the LSTM gates for ALL timesteps at once (1 MXU op),
    #      reused by BOTH the encode and the decode pass.
    gates_x = (jnp.dot(xs, w_ih_t_ref[...], preferred_element_type=jnp.float32)
               + b_ref[...])                                    # (T*Bp, 4H)

    def gate_math(gates, c):
        # gate layout (PyTorch): [ i | f | g | o ] along the 4H axis; g columns carry 2*g.
        sig = jax.nn.sigmoid(gates)          # ONE EUP push over the full (Bp, 4H) tile
        i = sig[:, 0 * H:1 * H]
        f = sig[:, 1 * H:2 * H]
        g = 2.0 * sig[:, 2 * H:3 * H] - 1.0  # tanh(g) == 2*sigmoid(2g) - 1, recovered on the VPU
        o = sig[:, 3 * H:4 * H]
        c_new = f * c + i * g
        h_new = o * jnp.tanh(c_new)          # second (and last) EUP push of the step
        return h_new, c_new

    # ---- encode(): LSTM from zero state; keep only the final (h, c)
    # t = 0 specialisation: h == c == 0  ->  no h@W_hh matmul, no f*c multiply.
    g0 = jax.nn.sigmoid(gates_x[0:Bp, :])
    c = g0[:, 0 * H:1 * H] * (2.0 * g0[:, 2 * H:3 * H] - 1.0)    # c1 = i*g
    h = g0[:, 3 * H:4 * H] * jnp.tanh(c)                          # h1 = o*tanh(c1)
    for t in range(1, T):                                         # T small & static -> unrolled
        gates = gates_x[t * Bp:(t + 1) * Bp, :] + jnp.dot(
            h, w_hh_t, preferred_element_type=jnp.float32)
        h, c = gate_math(gates, c)

    # ---- _decode_whole_seq(): LSTM from the encode state; stash per-step hiddens
    for t in range(T):
        gates = gates_x[t * Bp:(t + 1) * Bp, :] + jnp.dot(
            h, w_hh_t, preferred_element_type=jnp.float32)
        h, c = gate_math(gates, c)
        hs_ref[t * Bp:(t + 1) * Bp, :] = h                        # full (8, H) tile store

    # ---- projector (both Linears folded by the wrapper): one batched MXU op, one store
    hs = hs_ref[...]                                              # (T*Bp, H)
    out_ref[...] = (jnp.dot(hs, wp_ref[...], preferred_element_type=jnp.float32)
                    + bp_ref[...])
    hn_ref[...] = h
    cn_ref[...] = c


def deepar_forward(x, params):
    """x: (B, T, I) batch-first; params in PyTorch LSTM/Linear layout."""
    w_ih, w_hh, b_ih, b_hh, w1, b1, w2, b2 = params

    # Layout plumbing done once in XLA, outside the kernel.
    # Zero-pad the batch to a full 8-row sublane tile, then time-major flatten.
    x_pad = jnp.zeros((Bp, T, I), jnp.float32).at[:B].set(x)
    x_flat = jnp.transpose(x_pad, (1, 0, 2)).reshape(T * Bp, I)   # (T*Bp, I)

    # Pre-scale the g-gate columns by 2 so tanh(g) can be recovered from one sigmoid pass.
    gate_scale = jnp.ones((1, 4 * H), jnp.float32).at[:, 2 * H:3 * H].set(2.0)
    w_ih_t = w_ih.T * gate_scale                                  # (I, 4H)
    w_hh_t = w_hh.T * gate_scale                                  # (H, 4H)
    b = (b_ih + b_hh) * gate_scale                                # (1, 4H)

    # Fold the two projector Linears (no activation between them).
    wp = w1.T @ w2.T                                              # (H, A)
    bp = b1 @ w2.T + b2                                           # (1, A)

    vmem = lambda: pl.BlockSpec(memory_space=pltpu.MemorySpace.VMEM)
    out_shape = (
        jax.ShapeDtypeStruct((T * Bp, A), jnp.float32),  # time-major flat projector output
        jax.ShapeDtypeStruct((Bp, H), jnp.float32),      # h_n (padded)
        jax.ShapeDtypeStruct((Bp, H), jnp.float32),      # c_n (padded)
    )
    out_flat, hn, cn = pl.pallas_call(
        deepar_kernel,
        out_shape=out_shape,
        in_specs=[vmem() for _ in range(6)],
        out_specs=(vmem(), vmem(), vmem()),
        scratch_shapes=[pltpu.VMEM((T * Bp, H), jnp.float32)],    # decode hidden states
    )(x_flat, w_ih_t, w_hh_t, b, wp, bp)

    # Strip batch padding, restore batch-first layout, PyTorch-style (num_layers, B, H) state.
    out = out_flat.reshape(T, Bp, A)[:, :B].transpose(1, 0, 2)    # (B, T, A)
    return out, hn[:B][None], cn[:B][None]


def deepar_reference(x, params):
    """Pure-JAX reference faithful to the PyTorch module (per-step everything, no folds)."""
    w_ih, w_hh, b_ih, b_hh, w1, b1, w2, b2 = params
    b = b_ih + b_hh
    mean = jnp.mean(x, axis=-1, keepdims=True)
    var = jnp.mean((x - mean) ** 2, axis=-1, keepdims=True)
    xs = (x - mean) / (jnp.sqrt(jnp.sqrt(var)) + EPS)

    def lstm_step(x_t, h, c):
        gates = x_t @ w_ih.T + h @ w_hh.T + b
        i = jax.nn.sigmoid(gates[:, 0 * H:1 * H])
        f = jax.nn.sigmoid(gates[:, 1 * H:2 * H])
        g = jnp.tanh(gates[:, 2 * H:3 * H])
        o = jax.nn.sigmoid(gates[:, 3 * H:4 * H])
        c_new = f * c + i * g
        return o * jnp.tanh(c_new), c_new

    h = jnp.zeros((B, H), jnp.float32)
    c = jnp.zeros((B, H), jnp.float32)
    for t in range(T):
        h, c = lstm_step(xs[:, t, :], h, c)
    h_d, c_d = h, c
    outs = []
    for t in range(T):
        h_d, c_d = lstm_step(xs[:, t, :], h_d, c_d)
        z1 = h_d @ w1.T + b1
        z2 = z1 @ w2.T + b2
        outs.append(z2)
    return jnp.stack(outs, axis=1), h_d[None], c_d[None]


def init_params(key):
    ks = jax.random.split(key, 8)
    s = 1.0 / jnp.sqrt(H)
    u = lambda k, shape: jax.random.uniform(k, shape, jnp.float32, -s, s)
    w_ih = u(ks[0], (4 * H, I))
    w_hh = u(ks[1], (4 * H, H))
    b_ih = u(ks[2], (1, 4 * H))
    b_hh = u(ks[3], (1, 4 * H))
    w1 = u(ks[4], (H, H))
    b1 = u(ks[5], (1, H))
    w2 = u(ks[6], (A, H))
    b2 = u(ks[7], (1, A))
    return (w_ih, w_hh, b_ih, b_hh, w1, b1, w2, b2)


if __name__ == "__main__":
    key = jax.random.PRNGKey(0)
    k_x, k_p = jax.random.split(key)
    x = jax.random.normal(k_x, (B, T, I), jnp.float32)
    params = init_params(k_p)

    out, hn, cn = deepar_forward(x, params)
    jax.block_until_ready((out, hn, cn))

    ref_out, ref_hn, ref_cn = deepar_reference(x, params)
    assert jnp.allclose(out, ref_out, rtol=1e-5, atol=1e-5)
    assert jnp.allclose(hn, ref_hn, rtol=1e-5, atol=1e-5)
    assert jnp.allclose(cn, ref_cn, rtol=1e-5, atol=1e-5)

    # TODO(synk): forecast()/to_quantiles()/to_samples()/to_predictions() rely on
    # torch.distributions sampling & icdf; only the deterministic forward
    # (mode='raw' training path) is kernelized.
    print("KERNEL_OK")
</pallas_src>

<mosaic_0001>
module attributes {stable_mosaic.version = 11 : i64} {
  func.func @deepar_kernel(%arg0: memref<64x4xf32, #tpu.memory_space<vmem>>, %arg1: memref<4x128xf32, #tpu.memory_space<vmem>>, %arg2: memref<32x128xf32, #tpu.memory_space<vmem>>, %arg3: memref<1x128xf32, #tpu.memory_space<vmem>>, %arg4: memref<32x2xf32, #tpu.memory_space<vmem>>, %arg5: memref<1x2xf32, #tpu.memory_space<vmem>>, %arg6: memref<64x2xf32, #tpu.memory_space<vmem>>, %arg7: memref<8x32xf32, #tpu.memory_space<vmem>>, %arg8: memref<8x32xf32, #tpu.memory_space<vmem>>, %arg9: memref<64x32xf32, #tpu.memory_space<vmem>>) attributes {dimension_semantics = [], scalar_prefetch = 0 : i64, scratch_operands = 1 : i64, tpu.core_type = #tpu.core_type<tc>} {
    %c0 = arith.constant 0 : index
    %c0_0 = arith.constant 0 : index
    %0 = vector.load %arg0[%c0, %c0_0] : memref<64x4xf32, #tpu.memory_space<vmem>>, vector<64x4xf32>
    %c0_1 = arith.constant 0 : index
    %c0_2 = arith.constant 0 : index
    %1 = vector.load %arg2[%c0_1, %c0_2] : memref<32x128xf32, #tpu.memory_space<vmem>>, vector<32x128xf32>
    %cst = arith.constant dense<0.000000e+00> : vector<64xf32>
    %2 = vector.multi_reduction <add>, %0, %cst [1] : vector<64x4xf32> to vector<64xf32>
    %3 = vector.shape_cast %2 : vector<64xf32> to vector<64x1xf32>
    %cst_3 = arith.constant 4.000000e+00 : f32
    %4 = vector.broadcast %cst_3 : f32 to vector<64x1xf32>
    %5 = arith.divf %3, %4 : vector<64x1xf32>
    %6 = vector.broadcast %5 : vector<64x1xf32> to vector<64x4xf32>
    %7 = arith.subf %0, %6 : vector<64x4xf32>
    %8 = arith.mulf %7, %7 : vector<64x4xf32>
    %cst_4 = arith.constant dense<0.000000e+00> : vector<64xf32>
    %9 = vector.multi_reduction <add>, %8, %cst_4 [1] : vector<64x4xf32> to vector<64xf32>
    %10 = vector.shape_cast %9 : vector<64xf32> to vector<64x1xf32>
    %cst_5 = arith.constant 4.000000e+00 : f32
    %11 = vector.broadcast %cst_5 : f32 to vector<64x1xf32>
    %12 = arith.divf %10, %11 : vector<64x1xf32>
    %13 = math.sqrt %12 : vector<64x1xf32>
    %14 = math.sqrt %13 : vector<64x1xf32>
    %cst_6 = arith.constant 1.000000e-10 : f32
    %15 = vector.broadcast %cst_6 : f32 to vector<64x1xf32>
    %16 = arith.addf %14, %15 : vector<64x1xf32>
    %17 = vector.broadcast %5 : vector<64x1xf32> to vector<64x4xf32>
    %18 = arith.subf %0, %17 : vector<64x4xf32>
    %19 = vector.broadcast %16 : vector<64x1xf32> to vector<64x4xf32>
    %20 = arith.divf %18, %19 : vector<64x4xf32>
    %c0_7 = arith.constant 0 : index
    %c0_8 = arith.constant 0 : index
    %21 = vector.load %arg1[%c0_7, %c0_8] : memref<4x128xf32, #tpu.memory_space<vmem>>, vector<4x128xf32>
    %cst_9 = arith.constant dense<0.000000e+00> : vector<64x128xf32>
    %22 = tpu.matmul %20, %21, %cst_9 {dimension_numbers = #tpu.dot_dimension_numbers<[1], [0], [0], [1], [0, 0, 1, 1], [], []>} : vector<64x4xf32>, vector<4x128xf32>, vector<64x128xf32> -> vector<64x128xf32>
    %c0_10 = arith.constant 0 : index
    %c0_11 = arith.constant 0 : index
    %23 = vector.load %arg3[%c0_10, %c0_11] : memref<1x128xf32, #tpu.memory_space<vmem>>, vector<1x128xf32>
    %24 = vector.broadcast %23 : vector<1x128xf32> to vector<64x128xf32>
    %25 = arith.addf %22, %24 : vector<64x128xf32>
    %26 = vector.extract_strided_slice %25 {offsets = [0, 0], sizes = [8, 128], strides = [1, 1]} : vector<64x128xf32> to vector<8x128xf32>
    %27 = arith.negf %26 : vector<8x128xf32>
    %28 = math.exp %27 : vector<8x128xf32>
    %cst_12 = arith.constant 1.000000e+00 : f32
    %29 = vector.broadcast %cst_12 : f32 to vector<8x128xf32>
    %30 = arith.addf %29, %28 : vector<8x128xf32>
    %31 = arith.divf %29, %30 : vector<8x128xf32>
    %32 = vector.extract_strided_slice %31 {offsets = [0, 0], sizes = [8, 32], strides = [1, 1]} : vector<8x128xf32> to vector<8x32xf32>
    %33 = vector.extract_strided_slice %31 {offsets = [0, 64], sizes = [8, 32], strides = [1, 1]} : vector<8x128xf32> to vector<8x32xf32>
    %cst_13 = arith.constant 2.000000e+00 : f32
    %34 = vector.broadcast %cst_13 : f32 to vector<8x32xf32>
    %35 = arith.mulf %34, %33 : vector<8x32xf32>
    %cst_14 = arith.constant 1.000000e+00 : f32
    %36 = vector.broadcast %cst_14 : f32 to vector<8x32xf32>
    %37 = arith.subf %35, %36 : vector<8x32xf32>
    %38 = arith.mulf %32, %37 : vector<8x32xf32>
    %39 = vector.extract_strided_slice %31 {offsets = [0, 96], sizes = [8, 32], strides = [1, 1]} : vector<8x128xf32> to vector<8x32xf32>
    %40 = math.tanh %38 : vector<8x32xf32>
    %41 = arith.mulf %39, %40 : vector<8x32xf32>
    %42 = vector.extract_strided_slice %25 {offsets = [8, 0], sizes = [8, 128], strides = [1, 1]} : vector<64x128xf32> to vector<8x128xf32>
    %cst_15 = arith.constant dense<0.000000e+00> : vector<8x128xf32>
    %43 = tpu.matmul %41, %1, %cst_15 {dimension_numbers = #tpu.dot_dimension_numbers<[1], [0], [0], [1], [0, 0, 1, 1], [], []>} : vector<8x32xf32>, vector<32x128xf32>, vector<8x128xf32> -> vector<8x128xf32>
    %44 = arith.addf %42, %43 : vector<8x128xf32>
    %45 = arith.negf %44 : vector<8x128xf32>
    %46 = math.exp %45 : vector<8x128xf32>
    %cst_16 = arith.constant 1.000000e+00 : f32
    %47 = vector.broadcast %cst_16 : f32 to vector<8x128xf32>
    %48 = arith.addf %47, %46 : vector<8x128xf32>
    %49 = arith.divf %47, %48 : vector<8x128xf32>
    %50 = vector.extract_strided_slice %49 {offsets = [0, 0], sizes = [8, 32], strides = [1, 1]} : vector<8x128xf32> to vector<8x32xf32>
    %51 = vector.extract_strided_slice %49 {offsets = [0, 32], sizes = [8, 32], strides = [1, 1]} : vector<8x128xf32> to vector<8x32xf32>
    %52 = vector.extract_strided_slice %49 {offsets = [0, 64], sizes = [8, 32], strides = [1, 1]} : vector<8x128xf32> to vector<8x32xf32>
    %cst_17 = arith.constant 2.000000e+00 : f32
    %53 = vector.broadcast %cst_17 : f32 to vector<8x32xf32>
    %54 = arith.mulf %53, %52 : vector<8x32xf32>
    %cst_18 = arith.constant 1.000000e+00 : f32
    %55 = vector.broadcast %cst_18 : f32 to vector<8x32xf32>
    %56 = arith.subf %54, %55 : vector<8x32xf32>
    %57 = vector.extract_strided_slice %49 {offsets = [0, 96], sizes = [8, 32], strides = [1, 1]} : vector<8x128xf32> to vector<8x32xf32>
    %58 = arith.mulf %51, %38 : vector<8x32xf32>
    %59 = arith.mulf %50, %56 : vector<8x32xf32>
    %60 = arith.addf %58, %59 : vector<8x32xf32>
    %61 = math.tanh %60 : vector<8x32xf32>
    %62 = arith.mulf %57, %61 : vector<8x32xf32>
    %63 = vector.extract_strided_slice %25 {offsets = [16, 0], sizes = [8, 128], strides = [1, 1]} : vector<64x128xf32> to vector<8x128xf32>
    %cst_19 = arith.constant dense<0.000000e+00> : vector<8x128xf32>
    %64 = tpu.matmul %62, %1, %cst_19 {dimension_numbers = #tpu.dot_dimension_numbers<[1], [0], [0], [1], [0, 0, 1, 1], [], []>} : vector<8x32xf32>, vector<32x128xf32>, vector<8x128xf32> -> vector<8x128xf32>
    %65 = arith.addf %63, %64 : vector<8x128xf32>
    %66 = arith.negf %65 : vector<8x128xf32>
    %67 = math.exp %66 : vector<8x128xf32>
    %cst_20 = arith.constant 1.000000e+00 : f32
    %68 = vector.broadcast %cst_20 : f32 to vector<8x128xf32>
    %69 = arith.addf %68, %67 : vector<8x128xf32>
    %70 = arith.divf %68, %69 : vector<8x128xf32>
    %71 = vector.extract_strided_slice %70 {offsets = [0, 0], sizes = [8, 32], strides = [1, 1]} : vector<8x128xf32> to vector<8x32xf32>
    %72 = vector.extract_strided_slice %70 {offsets = [0, 32], sizes = [8, 32], strides = [1, 1]} : vector<8x128xf32> to vector<8x32xf32>
    %73 = vector.extract_strided_slice %70 {offsets = [0, 64], sizes = [8, 32], strides = [1, 1]} : vector<8x128xf32> to vector<8x32xf32>
    %cst_21 = arith.constant 2.000000e+00 : f32
    %74 = vector.broadcast %cst_21 : f32 to vector<8x32xf32>
    %75 = arith.mulf %74, %73 : vector<8x32xf32>
    %cst_22 = arith.constant 1.000000e+00 : f32
    %76 = vector.broadcast %cst_22 : f32 to vector<8x32xf32>
    %77 = arith.subf %75, %76 : vector<8x32xf32>
    %78 = vector.extract_strided_slice %70 {offsets = [0, 96], sizes = [8, 32], strides = [1, 1]} : vector<8x128xf32> to vector<8x32xf32>
    %79 = arith.mulf %72, %60 : vector<8x32xf32>
    %80 = arith.mulf %71, %77 : vector<8x32xf32>
    %81 = arith.addf %79, %80 : vector<8x32xf32>
    %82 = math.tanh %81 : vector<8x32xf32>
    %83 = arith.mulf %78, %82 : vector<8x32xf32>
    %84 = vector.extract_strided_slice %25 {offsets = [24, 0], sizes = [8, 128], strides = [1, 1]} : vector<64x128xf32> to vector<8x128xf32>
    %cst_23 = arith.constant dense<0.000000e+00> : vector<8x128xf32>
    %85 = tpu.matmul %83, %1, %cst_23 {dimension_numbers = #tpu.dot_dimension_numbers<[1], [0], [0], [1], [0, 0, 1, 1], [], []>} : vector<8x32xf32>, vector<32x128xf32>, vector<8x128xf32> -> vector<8x128xf32>
    %86 = arith.addf %84, %85 : vector<8x128xf32>
    %87 = arith.negf %86 : vector<8x128xf32>
    %88 = math.exp %87 : vector<8x128xf32>
    %cst_24 = arith.constant 1.000000e+00 : f32
    %89 = vector.broadcast %cst_24 : f32 to vector<8x128xf32>
    %90 = arith.addf %89, %88 : vector<8x128xf32>
    %91 = arith.divf %89, %90 : vector<8x128xf32>
    %92 = vector.extract_strided_slice %91 {offsets = [0, 0], sizes = [8, 32], strides = [1, 1]} : vector<8x128xf32> to vector<8x32xf32>
    %93 = vector.extract_strided_slice %91 {offsets = [0, 32], sizes = [8, 32], strides = [1, 1]} : vector<8x128xf32> to vector<8x32xf32>
    %94 = vector.extract_strided_slice %91 {offsets = [0, 64], sizes = [8, 32], strides = [1, 1]} : vector<8x128xf32> to vector<8x32xf32>
    %cst_25 = arith.constant 2.000000e+00 : f32
    %95 = vector.broadcast %cst_25 : f32 to vector<8x32xf32>
    %96 = arith.mulf %95, %94 : vector<8x32xf32>
    %cst_26 = arith.constant 1.000000e+00 : f32
    %97 = vector.broadcast %cst_26 : f32 to vector<8x32xf32>
    %98 = arith.subf %96, %97 : vector<8x32xf32>
    %99 = vector.extract_strided_slice %91 {offsets = [0, 96], sizes = [8, 32], strides = [1, 1]} : vector<8x128xf32> to vector<8x32xf32>
    %100 = arith.mulf %93, %81 : vector<8x32xf32>
    %101 = arith.mulf %92, %98 : vector<8x32xf32>
    %102 = arith.addf %100, %101 : vector<8x32xf32>
    %103 = math.tanh %102 : vector<8x32xf32>
    %104 = arith.mulf %99, %103 : vector<8x32xf32>
    %105 = vector.extract_strided_slice %25 {offsets = [32, 0], sizes = [8, 128], strides = [1, 1]} : vector<64x128xf32> to vector<8x128xf32>
    %cst_27 = arith.constant dense<0.000000e+00> : vector<8x128xf32>
    %106 = tpu.matmul %104, %1, %cst_27 {dimension_numbers = #tpu.dot_dimension_numbers<[1], [0], [0], [1], [0, 0, 1, 1], [], []>} : vector<8x32xf32>, vector<32x128xf32>, vector<8x128xf32> -> vector<8x128xf32>
    %107 = arith.addf %105, %106 : vector<8x128xf32>
    %108 = arith.negf %107 : vector<8x128xf32>
    %109 = math.exp %108 : vector<8x128xf32>
    %cst_28 = arith.constant 1.000000e+00 : f32
    %110 = vector.broadcast %cst_28 : f32 to vector<8x128xf32>
    %111 = arith.addf %110, %109 : vector<8x128xf32>
    %112 = arith.divf %110, %111 : vector<8x128xf32>
    %113 = vector.extract_strided_slice %112 {offsets = [0, 0], sizes = [8, 32], strides = [1, 1]} : vector<8x128xf32> to vector<8x32xf32>
    %114 = vector.extract_strided_slice %112 {offsets = [0, 32], sizes = [8, 32], strides = [1, 1]} : vector<8x128xf32> to vector<8x32xf32>
    %115 = vector.extract_strided_slice %112 {offsets = [0, 64], sizes = [8, 32], strides = [1, 1]} : vector<8x128xf32> to vector<8x32xf32>
    %cst_29 = arith.constant 2.000000e+00 : f32
    %116 = vector.broadcast %cst_29 : f32 to vector<8x32xf32>
    %117 = arith.mulf %116, %115 : vector<8x32xf32>
    %cst_30 = arith.constant 1.000000e+00 : f32
    %118 = vector.broadcast %cst_30 : f32 to vector<8x32xf32>
    %119 = arith.subf %117, %118 : vector<8x32xf32>
    %120 = vector.extract_strided_slice %112 {offsets = [0, 96], sizes = [8, 32], strides = [1, 1]} : vector<8x128xf32> to vector<8x32xf32>
    %121 = arith.mulf %114, %102 : vector<8x32xf32>
    %122 = arith.mulf %113, %119 : vector<8x32xf32>
    %123 = arith.addf %121, %122 : vector<8x32xf32>
    %124 = math.tanh %123 : vector<8x32xf32>
    %125 = arith.mulf %120, %124 : vector<8x32xf32>
    %126 = vector.extract_strided_slice %25 {offsets = [40, 0], sizes = [8, 128], strides = [1, 1]} : vector<64x128xf32> to vector<8x128xf32>
    %cst_31 = arith.constant dense<0.000000e+00> : vector<8x128xf32>
    %127 = tpu.matmul %125, %1, %cst_31 {dimension_numbers = #tpu.dot_dimension_numbers<[1], [0], [0], [1], [0, 0, 1, 1], [], []>} : vector<8x32xf32>, vector<32x128xf32>, vector<8x128xf32> -> vector<8x128xf32>
    %128 = arith.addf %126, %127 : vector<8x128xf32>
    %129 = arith.negf %128 : vector<8x128xf32>
    %130 = math.exp %129 : vector<8x128xf32>
    %cst_32 = arith.constant 1.000000e+00 : f32
    %131 = vector.broadcast %cst_32 : f32 to vector<8x128xf32>
    %132 = arith.addf %131, %130 : vector<8x128xf32>
    %133 = arith.divf %131, %132 : vector<8x128xf32>
    %134 = vector.extract_strided_slice %133 {offsets = [0, 0], sizes = [8, 32], strides = [1, 1]} : vector<8x128xf32> to vector<8x32xf32>
    %135 = vector.extract_strided_slice %133 {offsets = [0, 32], sizes = [8, 32], strides = [1, 1]} : vector<8x128xf32> to vector<8x32xf32>
    %136 = vector.extract_strided_slice %133 {offsets = [0, 64], sizes = [8, 32], strides = [1, 1]} : vector<8x128xf32> to vector<8x32xf32>
    %cst_33 = arith.constant 2.000000e+00 : f32
    %137 = vector.broadcast %cst_33 : f32 to vector<8x32xf32>
    %138 = arith.mulf %137, %136 : vector<8x32xf32>
    %cst_34 = arith.constant 1.000000e+00 : f32
    %139 = vector.broadcast %cst_34 : f32 to vector<8x32xf32>
    %140 = arith.subf %138, %139 : vector<8x32xf32>
    %141 = vector.extract_strided_slice %133 {offsets = [0, 96], sizes = [8, 32], strides = [1, 1]} : vector<8x128xf32> to vector<8x32xf32>
    %142 = arith.mulf %135, %123 : vector<8x32xf32>
    %143 = arith.mulf %134, %140 : vector<8x32xf32>
    %144 = arith.addf %142, %143 : vector<8x32xf32>
    %145 = math.tanh %144 : vector<8x32xf32>
    %146 = arith.mulf %141, %145 : vector<8x32xf32>
    %147 = vector.extract_strided_slice %25 {offsets = [48, 0], sizes = [8, 128], strides = [1, 1]} : vector<64x128xf32> to vector<8x128xf32>
    %cst_35 = arith.constant dense<0.000000e+00> : vector<8x128xf32>
    %148 = tpu.matmul %146, %1, %cst_35 {dimension_numbers = #tpu.dot_dimension_numbers<[1], [0], [0], [1], [0, 0, 1, 1], [], []>} : vector<8x32xf32>, vector<32x128xf32>, vector<8x128xf32> -> vector<8x128xf32>
    %149 = arith.addf %147, %148 : vector<8x128xf32>
    %150 = arith.negf %149 : vector<8x128xf32>
    %151 = math.exp %150 : vector<8x128xf32>
    %cst_36 = arith.constant 1.000000e+00 : f32
    %152 = vector.broadcast %cst_36 : f32 to vector<8x128xf32>
    %153 = arith.addf %152, %151 : vector<8x128xf32>
    %154 = arith.divf %152, %153 : vector<8x128xf32>
    %155 = vector.extract_strided_slice %154 {offsets = [0, 0], sizes = [8, 32], strides = [1, 1]} : vector<8x128xf32> to vector<8x32xf32>
    %156 = vector.extract_strided_slice %154 {offsets = [0, 32], sizes = [8, 32], strides = [1, 1]} : vector<8x128xf32> to vector<8x32xf32>
    %157 = vector.extract_strided_slice %154 {offsets = [0, 64], sizes = [8, 32], strides = [1, 1]} : vector<8x128xf32> to vector<8x32xf32>
    %cst_37 = arith.constant 2.000000e+00 : f32
    %158 = vector.broadcast %cst_37 : f32 to vector<8x32xf32>
    %159 = arith.mulf %158, %157 : vector<8x32xf32>
    %cst_38 = arith.constant 1.000000e+00 : f32
    %160 = vector.broadcast %cst_38 : f32 to vector<8x32xf32>
    %161 = arith.subf %159, %160 : vector<8x32xf32>
    %162 = vector.extract_strided_slice %154 {offsets = [0, 96], sizes = [8, 32], strides = [1, 1]} : vector<8x128xf32> to vector<8x32xf32>
    %163 = arith.mulf %156, %144 : vector<8x32xf32>
    %164 = arith.mulf %155, %161 : vector<8x32xf32>
    %165 = arith.addf %163, %164 : vector<8x32xf32>
    %166 = math.tanh %165 : vector<8x32xf32>
    %167 = arith.mulf %162, %166 : vector<8x32xf32>
    %168 = vector.extract_strided_slice %25 {offsets = [56, 0], sizes = [8, 128], strides = [1, 1]} : vector<64x128xf32> to vector<8x128xf32>
    %cst_39 = arith.constant dense<0.000000e+00> : vector<8x128xf32>
    %169 = tpu.matmul %167, %1, %cst_39 {dimension_numbers = #tpu.dot_dimension_numbers<[1], [0], [0], [1], [0, 0, 1, 1], [], []>} : vector<8x32xf32>, vector<32x128xf32>, vector<8x128xf32> -> vector<8x128xf32>
    %170 = arith.addf %168, %169 : vector<8x128xf32>
    %171 = arith.negf %170 : vector<8x128xf32>
    %172 = math.exp %171 : vector<8x128xf32>
    %cst_40 = arith.constant 1.000000e+00 : f32
    %173 = vector.broadcast %cst_40 : f32 to vector<8x128xf32>
    %174 = arith.addf %173, %172 : vector<8x128xf32>
    %175 = arith.divf %173, %174 : vector<8x128xf32>
    %176 = vector.extract_strided_slice %175 {offsets = [0, 0], sizes = [8, 32], strides = [1, 1]} : vector<8x128xf32> to vector<8x32xf32>
    %177 = vector.extract_strided_slice %175 {offsets = [0, 32], sizes = [8, 32], strides = [1, 1]} : vector<8x128xf32> to vector<8x32xf32>
    %178 = vector.extract_strided_slice %175 {offsets = [0, 64], sizes = [8, 32], strides = [1, 1]} : vector<8x128xf32> to vector<8x32xf32>
    %cst_41 = arith.constant 2.000000e+00 : f32
    %179 = vector.broadcast %cst_41 : f32 to vector<8x32xf32>
    %180 = arith.mulf %179, %178 : vector<8x32xf32>
    %cst_42 = arith.constant 1.000000e+00 : f32
    %181 = vector.broadcast %cst_42 : f32 to vector<8x32xf32>
    %182 = arith.subf %180, %181 : vector<8x32xf32>
    %183 = vector.extract_strided_slice %175 {offsets = [0, 96], sizes = [8, 32], strides = [1, 1]} : vector<8x128xf32> to vector<8x32xf32>
    %184 = arith.mulf %177, %165 : vector<8x32xf32>
    %185 = arith.mulf %176, %182 : vector<8x32xf32>
    %186 = arith.addf %184, %185 : vector<8x32xf32>
    %187 = math.tanh %186 : vector<8x32xf32>
    %188 = arith.mulf %183, %187 : vector<8x32xf32>
    %189 = vector.extract_strided_slice %25 {offsets = [0, 0], sizes = [8, 128], strides = [1, 1]} : vector<64x128xf32> to vector<8x128xf32>
    %cst_43 = arith.constant dense<0.000000e+00> : vector<8x128xf32>
    %190 = tpu.matmul %188, %1, %cst_43 {dimension_numbers = #tpu.dot_dimension_numbers<[1], [0], [0], [1], [0, 0, 1, 1], [], []>} : vector<8x32xf32>, vector<32x128xf32>, vector<8x128xf32> -> vector<8x128xf32>
    %191 = arith.addf %189, %190 : vector<8x128xf32>
    %192 = arith.negf %191 : vector<8x128xf32>
    %193 = math.exp %192 : vector<8x128xf32>
    %cst_44 = arith.constant 1.000000e+00 : f32
    %194 = vector.broadcast %cst_44 : f32 to vector<8x128xf32>
    %195 = arith.addf %194, %193 : vector<8x128xf32>
    %196 = arith.divf %194, %195 : vector<8x128xf32>
    %197 = vector.extract_strided_slice %196 {offsets = [0, 0], sizes = [8, 32], strides = [1, 1]} : vector<8x128xf32> to vector<8x32xf32>
    %198 = vector.extract_strided_slice %196 {offsets = [0, 32], sizes = [8, 32], strides = [1, 1]} : vector<8x128xf32> to vector<8x32xf32>
    %199 = vector.extract_strided_slice %196 {offsets = [0, 64], sizes = [8, 32], strides = [1, 1]} : vector<8x128xf32> to vector<8x32xf32>
    %cst_45 = arith.constant 2.000000e+00 : f32
    %200 = vector.broadcast %cst_45 : f32 to vector<8x32xf32>
    %201 = arith.mulf %200, %199 : vector<8x32xf32>
    %cst_46 = arith.constant 1.000000e+00 : f32
    %202 = vector.broadcast %cst_46 : f32 to vector<8x32xf32>
    %203 = arith.subf %201, %202 : vector<8x32xf32>
    %204 = vector.extract_strided_slice %196 {offsets = [0, 96], sizes = [8, 32], strides = [1, 1]} : vector<8x128xf32> to vector<8x32xf32>
    %205 = arith.mulf %198, %186 : vector<8x32xf32>
    %206 = arith.mulf %197, %203 : vector<8x32xf32>
    %207 = arith.addf %205, %206 : vector<8x32xf32>
    %208 = math.tanh %207 : vector<8x32xf32>
    %209 = arith.mulf %204, %208 : vector<8x32xf32>
    %c0_47 = arith.constant 0 : index
    %c0_48 = arith.constant 0 : index
    %210 = vector.load %arg9[%c0_47, %c0_48] : memref<64x32xf32, #tpu.memory_space<vmem>>, vector<8x32xf32>
    tpu.vector_store %arg9[%c0_47, %c0_48], %209 {strides = array<i32>} : memref<64x32xf32, #tpu.memory_space<vmem>>, vector<8x32xf32>,
    %211 = vector.extract_strided_slice %25 {offsets = [8, 0], sizes = [8, 128], strides = [1, 1]} : vector<64x128xf32> to vector<8x128xf32>
    %cst_49 = arith.constant dense<0.000000e+00> : vector<8x128xf32>
    %212 = tpu.matmul %209, %1, %cst_49 {dimension_numbers = #tpu.dot_dimension_numbers<[1], [0], [0], [1], [0, 0, 1, 1], [], []>} : vector<8x32xf32>, vector<32x128xf32>, vector<8x128xf32> -> vector<8x128xf32>
    %213 = arith.addf %211, %212 : vector<8x128xf32>
    %214 = arith.negf %213 : vector<8x128xf32>
    %215 = math.exp %214 : vector<8x128xf32>
    %cst_50 = arith.constant 1.000000e+00 : f32
    %216 = vector.broadcast %cst_50 : f32 to vector<8x128xf32>
    %217 = arith.addf %216, %215 : vector<8x128xf32>
    %218 = arith.divf %216, %217 : vector<8x128xf32>
    %219 = vector.extract_strided_slice %218 {offsets = [0, 0], sizes = [8, 32], strides = [1, 1]} : vector<8x128xf32> to vector<8x32xf32>
    %220 = vector.extract_strided_slice %218 {offsets = [0, 32], sizes = [8, 32], strides = [1, 1]} : vector<8x128xf32> to vector<8x32xf32>
    %221 = vector.extract_strided_slice %218 {offsets = [0, 64], sizes = [8, 32], strides = [1, 1]} : vector<8x128xf32> to vector<8x32xf32>
    %cst_51 = arith.constant 2.000000e+00 : f32
    %222 = vector.broadcast %cst_51 : f32 to vector<8x32xf32>
    %223 = arith.mulf %222, %221 : vector<8x32xf32>
    %cst_52 = arith.constant 1.000000e+00 : f32
    %224 = vector.broadcast %cst_52 : f32 to vector<8x32xf32>
    %225 = arith.subf %223, %224 : vector<8x32xf32>
    %226 = vector.extract_strided_slice %218 {offsets = [0, 96], sizes = [8, 32], strides = [1, 1]} : vector<8x128xf32> to vector<8x32xf32>
    %227 = arith.mulf %220, %207 : vector<8x32xf32>
    %228 = arith.mulf %219, %225 : vector<8x32xf32>
    %229 = arith.addf %227, %228 : vector<8x32xf32>
    %230 = math.tanh %229 : vector<8x32xf32>
    %231 = arith.mulf %226, %230 : vector<8x32xf32>
    %c8 = arith.constant 8 : index
    %c0_53 = arith.constant 0 : index
    %232 = vector.load %arg9[%c8, %c0_53] : memref<64x32xf32, #tpu.memory_space<vmem>>, vector<8x32xf32>
    tpu.vector_store %arg9[%c8, %c0_53], %231 {strides = array<i32>} : memref<64x32xf32, #tpu.memory_space<vmem>>, vector<8x32xf32>,
    %233 = vector.extract_strided_slice %25 {offsets = [16, 0], sizes = [8, 128], strides = [1, 1]} : vector<64x128xf32> to vector<8x128xf32>
    %cst_54 = arith.constant dense<0.000000e+00> : vector<8x128xf32>
    %234 = tpu.matmul %231, %1, %cst_54 {dimension_numbers = #tpu.dot_dimension_numbers<[1], [0], [0], [1], [0, 0, 1, 1], [], []>} : vector<8x32xf32>, vector<32x128xf32>, vector<8x128xf32> -> vector<8x128xf32>
    %235 = arith.addf %233, %234 : vector<8x128xf32>
    %236 = arith.negf %235 : vector<8x128xf32>
    %237 = math.exp %236 : vector<8x128xf32>
    %cst_55 = arith.constant 1.000000e+00 : f32
    %238 = vector.broadcast %cst_55 : f32 to vector<8x128xf32>
    %239 = arith.addf %238, %237 : vector<8x128xf32>
    %240 = arith.divf %238, %239 : vector<8x128xf32>
    %241 = vector.extract_strided_slice %240 {offsets = [0, 0], sizes = [8, 32], strides = [1, 1]} : vector<8x128xf32> to vector<8x32xf32>
    %242 = vector.extract_strided_slice %240 {offsets = [0, 32], sizes = [8, 32], strides = [1, 1]} : vector<8x128xf32> to vector<8x32xf32>
    %243 = vector.extract_strided_slice %240 {offsets = [0, 64], sizes = [8, 32], strides = [1, 1]} : vector<8x128xf32> to vector<8x32xf32>
    %cst_56 = arith.constant 2.000000e+00 : f32
    %244 = vector.broadcast %cst_56 : f32 to vector<8x32xf32>
    %245 = arith.mulf %244, %243 : vector<8x32xf32>
    %cst_57 = arith.constant 1.000000e+00 : f32
    %246 = vector.broadcast %cst_57 : f32 to vector<8x32xf32>
    %247 = arith.subf %245, %246 : vector<8x32xf32>
    %248 = vector.extract_strided_slice %240 {offsets = [0, 96], sizes = [8, 32], strides = [1, 1]} : vector<8x128xf32> to vector<8x32xf32>
    %249 = arith.mulf %242, %229 : vector<8x32xf32>
    %250 = arith.mulf %241, %247 : vector<8x32xf32>
    %251 = arith.addf %249, %250 : vector<8x32xf32>
    %252 = math.tanh %251 : vector<8x32xf32>
    %253 = arith.mulf %248, %252 : vector<8x32xf32>
    %c16 = arith.constant 16 : index
    %c0_58 = arith.constant 0 : index
    %254 = vector.load %arg9[%c16, %c0_58] : memref<64x32xf32, #tpu.memory_space<vmem>>, vector<8x32xf32>
    tpu.vector_store %arg9[%c16, %c0_58], %253 {strides = array<i32>} : memref<64x32xf32, #tpu.memory_space<vmem>>, vector<8x32xf32>,
    %255 = vector.extract_strided_slice %25 {offsets = [24, 0], sizes = [8, 128], strides = [1, 1]} : vector<64x128xf32> to vector<8x128xf32>
    %cst_59 = arith.constant dense<0.000000e+00> : vector<8x128xf32>
    %256 = tpu.matmul %253, %1, %cst_59 {dimension_numbers = #tpu.dot_dimension_numbers<[1], [0], [0], [1], [0, 0, 1, 1], [], []>} : vector<8x32xf32>, vector<32x128xf32>, vector<8x128xf32> -> vector<8x128xf32>
    %257 = arith.addf %255, %256 : vector<8x128xf32>
    %258 = arith.negf %257 : vector<8x128xf32>
    %259 = math.exp %258 : vector<8x128xf32>
    %cst_60 = arith.constant 1.000000e+00 : f32
    %260 = vector.broadcast %cst_60 : f32 to vector<8x128xf32>
    %261 = arith.addf %260, %259 : vector<8x128xf32>
    %262 = arith.divf %260, %261 : vector<8x128xf32>
    %263 = vector.extract_strided_slice %262 {offsets = [0, 0], sizes = [8, 32], strides = [1, 1]} : vector<8x128xf32> to vector<8x32xf32>
    %264 = vector.extract_strided_slice %262 {offsets = [0, 32], sizes = [8, 32], strides = [1, 1]} : vector<8x128xf32> to vector<8x32xf32>
    %265 = vector.extract_strided_slice %262 {offsets = [0, 64], sizes = [8, 32], strides = [1, 1]} : vector<8x128xf32> to vector<8x32xf32>
    %cst_61 = arith.constant 2.000000e+00 : f32
    %266 = vector.broadcast %cst_61 : f32 to vector<8x32xf32>
    %267 = arith.mulf %266, %265 : vector<8x32xf32>
    %cst_62 = arith.constant 1.000000e+00 : f32
    %268 = vector.broadcast %cst_62 : f32 to vector<8x32xf32>
    %269 = arith.subf %267, %268 : vector<8x32xf32>
    %270 = vector.extract_strided_slice %262 {offsets = [0, 96], sizes = [8, 32], strides = [1, 1]} : vector<8x128xf32> to vector<8x32xf32>
    %271 = arith.mulf %264, %251 : vector<8x32xf32>
    %272 = arith.mulf %263, %269 : vector<8x32xf32>
    %273 = arith.addf %271, %272 : vector<8x32xf32>
    %274 = math.tanh %273 : vector<8x32xf32>
    %275 = arith.mulf %270, %274 : vector<8x32xf32>
    %c24 = arith.constant 24 : index
    %c0_63 = arith.constant 0 : index
    %276 = vector.load %arg9[%c24, %c0_63] : memref<64x32xf32, #tpu.memory_space<vmem>>, vector<8x32xf32>
    tpu.vector_store %arg9[%c24, %c0_63], %275 {strides = array<i32>} : memref<64x32xf32, #tpu.memory_space<vmem>>, vector<8x32xf32>,
    %277 = vector.extract_strided_slice %25 {offsets = [32, 0], sizes = [8, 128], strides = [1, 1]} : vector<64x128xf32> to vector<8x128xf32>
    %cst_64 = arith.constant dense<0.000000e+00> : vector<8x128xf32>
    %278 = tpu.matmul %275, %1, %cst_64 {dimension_numbers = #tpu.dot_dimension_numbers<[1], [0], [0], [1], [0, 0, 1, 1], [], []>} : vector<8x32xf32>, vector<32x128xf32>, vector<8x128xf32> -> vector<8x128xf32>
    %279 = arith.addf %277, %278 : vector<8x128xf32>
    %280 = arith.negf %279 : vector<8x128xf32>
    %281 = math.exp %280 : vector<8x128xf32>
    %cst_65 = arith.constant 1.000000e+00 : f32
    %282 = vector.broadcast %cst_65 : f32 to vector<8x128xf32>
    %283 = arith.addf %282, %281 : vector<8x128xf32>
    %284 = arith.divf %282, %283 : vector<8x128xf32>
    %285 = vector.extract_strided_slice %284 {offsets = [0, 0], sizes = [8, 32], strides = [1, 1]} : vector<8x128xf32> to vector<8x32xf32>
    %286 = vector.extract_strided_slice %284 {offsets = [0, 32], sizes = [8, 32], strides = [1, 1]} : vector<8x128xf32> to vector<8x32xf32>
    %287 = vector.extract_strided_slice %284 {offsets = [0, 64], sizes = [8, 32], strides = [1, 1]} : vector<8x128xf32> to vector<8x32xf32>
    %cst_66 = arith.constant 2.000000e+00 : f32
    %288 = vector.broadcast %cst_66 : f32 to vector<8x32xf32>
    %289 = arith.mulf %288, %287 : vector<8x32xf32>
    %cst_67 = arith.constant 1.000000e+00 : f32
    %290 = vector.broadcast %cst_67 : f32 to vector<8x32xf32>
    %291 = arith.subf %289, %290 : vector<8x32xf32>
    %292 = vector.extract_strided_slice %284 {offsets = [0, 96], sizes = [8, 32], strides = [1, 1]} : vector<8x128xf32> to vector<8x32xf32>
    %293 = arith.mulf %286, %273 : vector<8x32xf32>
    %294 = arith.mulf %285, %291 : vector<8x32xf32>
    %295 = arith.addf %293, %294 : vector<8x32xf32>
    %296 = math.tanh %295 : vector<8x32xf32>
    %297 = arith.mulf %292, %296 : vector<8x32xf32>
    %c32 = arith.constant 32 : index
    %c0_68 = arith.constant 0 : index
    %298 = vector.load %arg9[%c32, %c0_68] : memref<64x32xf32, #tpu.memory_space<vmem>>, vector<8x32xf32>
    tpu.vector_store %arg9[%c32, %c0_68], %297 {strides = array<i32>} : memref<64x32xf32, #tpu.memory_space<vmem>>, vector<8x32xf32>,
    %299 = vector.extract_strided_slice %25 {offsets = [40, 0], sizes = [8, 128], strides = [1, 1]} : vector<64x128xf32> to vector<8x128xf32>
    %cst_69 = arith.constant dense<0.000000e+00> : vector<8x128xf32>
    %300 = tpu.matmul %297, %1, %cst_69 {dimension_numbers = #tpu.dot_dimension_numbers<[1], [0], [0], [1], [0, 0, 1, 1], [], []>} : vector<8x32xf32>, vector<32x128xf32>, vector<8x128xf32> -> vector<8x128xf32>
    %301 = arith.addf %299, %300 : vector<8x128xf32>
    %302 = arith.negf %301 : vector<8x128xf32>
    %303 = math.exp %302 : vector<8x128xf32>
    %cst_70 = arith.constant 1.000000e+00 : f32
    %304 = vector.broadcast %cst_70 : f32 to vector<8x128xf32>
    %305 = arith.addf %304, %303 : vector<8x128xf32>
    %306 = arith.divf %304, %305 : vector<8x128xf32>
    %307 = vector.extract_strided_slice %306 {offsets = [0, 0], sizes = [8, 32], strides = [1, 1]} : vector<8x128xf32> to vector<8x32xf32>
    %308 = vector.extract_strided_slice %306 {offsets = [0, 32], sizes = [8, 32], strides = [1, 1]} : vector<8x128xf32> to vector<8x32xf32>
    %309 = vector.extract_strided_slice %306 {offsets = [0, 64], sizes = [8, 32], strides = [1, 1]} : vector<8x128xf32> to vector<8x32xf32>
    %cst_71 = arith.constant 2.000000e+00 : f32
    %310 = vector.broadcast %cst_71 : f32 to vector<8x32xf32>
    %311 = arith.mulf %310, %309 : vector<8x32xf32>
    %cst_72 = arith.constant 1.000000e+00 : f32
    %312 = vector.broadcast %cst_72 : f32 to vector<8x32xf32>
    %313 = arith.subf %311, %312 : vector<8x32xf32>
    %314 = vector.extract_strided_slice %306 {offsets = [0, 96], sizes = [8, 32], strides = [1, 1]} : vector<8x128xf32> to vector<8x32xf32>
    %315 = arith.mulf %308, %295 : vector<8x32xf32>
    %316 = arith.mulf %307, %313 : vector<8x32xf32>
    %317 = arith.addf %315, %316 : vector<8x32xf32>
    %318 = math.tanh %317 : vector<8x32xf32>
    %319 = arith.mulf %314, %318 : vector<8x32xf32>
    %c40 = arith.constant 40 : index
    %c0_73 = arith.constant 0 : index
    %320 = vector.load %arg9[%c40, %c0_73] : memref<64x32xf32, #tpu.memory_space<vmem>>, vector<8x32xf32>
    tpu.vector_store %arg9[%c40, %c0_73], %319 {strides = array<i32>} : memref<64x32xf32, #tpu.memory_space<vmem>>, vector<8x32xf32>,
    %321 = vector.extract_strided_slice %25 {offsets = [48, 0], sizes = [8, 128], strides = [1, 1]} : vector<64x128xf32> to vector<8x128xf32>
    %cst_74 = arith.constant dense<0.000000e+00> : vector<8x128xf32>
    %322 = tpu.matmul %319, %1, %cst_74 {dimension_numbers = #tpu.dot_dimension_numbers<[1], [0], [0], [1], [0, 0, 1, 1], [], []>} : vector<8x32xf32>, vector<32x128xf32>, vector<8x128xf32> -> vector<8x128xf32>
    %323 = arith.addf %321, %322 : vector<8x128xf32>
    %324 = arith.negf %323 : vector<8x128xf32>
    %325 = math.exp %324 : vector<8x128xf32>
    %cst_75 = arith.constant 1.000000e+00 : f32
    %326 = vector.broadcast %cst_75 : f32 to vector<8x128xf32>
    %327 = arith.addf %326, %325 : vector<8x128xf32>
    %328 = arith.divf %326, %327 : vector<8x128xf32>
    %329 = vector.extract_strided_slice %328 {offsets = [0, 0], sizes = [8, 32], strides = [1, 1]} : vector<8x128xf32> to vector<8x32xf32>
    %330 = vector.extract_strided_slice %328 {offsets = [0, 32], sizes = [8, 32], strides = [1, 1]} : vector<8x128xf32> to vector<8x32xf32>
    %331 = vector.extract_strided_slice %328 {offsets = [0, 64], sizes = [8, 32], strides = [1, 1]} : vector<8x128xf32> to vector<8x32xf32>
    %cst_76 = arith.constant 2.000000e+00 : f32
    %332 = vector.broadcast %cst_76 : f32 to vector<8x32xf32>
    %333 = arith.mulf %332, %331 : vector<8x32xf32>
    %cst_77 = arith.constant 1.000000e+00 : f32
    %334 = vector.broadcast %cst_77 : f32 to vector<8x32xf32>
    %335 = arith.subf %333, %334 : vector<8x32xf32>
    %336 = vector.extract_strided_slice %328 {offsets = [0, 96], sizes = [8, 32], strides = [1, 1]} : vector<8x128xf32> to vector<8x32xf32>
    %337 = arith.mulf %330, %317 : vector<8x32xf32>
    %338 = arith.mulf %329, %335 : vector<8x32xf32>
    %339 = arith.addf %337, %338 : vector<8x32xf32>
    %340 = math.tanh %339 : vector<8x32xf32>
    %341 = arith.mulf %336, %340 : vector<8x32xf32>
    %c48 = arith.constant 48 : index
    %c0_78 = arith.constant 0 : index
    %342 = vector.load %arg9[%c48, %c0_78] : memref<64x32xf32, #tpu.memory_space<vmem>>, vector<8x32xf32>
    tpu.vector_store %arg9[%c48, %c0_78], %341 {strides = array<i32>} : memref<64x32xf32, #tpu.memory_space<vmem>>, vector<8x32xf32>,
    %343 = vector.extract_strided_slice %25 {offsets = [56, 0], sizes = [8, 128], strides = [1, 1]} : vector<64x128xf32> to vector<8x128xf32>
    %cst_79 = arith.constant dense<0.000000e+00> : vector<8x128xf32>
    %344 = tpu.matmul %341, %1, %cst_79 {dimension_numbers = #tpu.dot_dimension_numbers<[1], [0], [0], [1], [0, 0, 1, 1], [], []>} : vector<8x32xf32>, vector<32x128xf32>, vector<8x128xf32> -> vector<8x128xf32>
    %345 = arith.addf %343, %344 : vector<8x128xf32>
    %346 = arith.negf %345 : vector<8x128xf32>
    %347 = math.exp %346 : vector<8x128xf32>
    %cst_80 = arith.constant 1.000000e+00 : f32
    %348 = vector.broadcast %cst_80 : f32 to vector<8x128xf32>
    %349 = arith.addf %348, %347 : vector<8x128xf32>
    %350 = arith.divf %348, %349 : vector<8x128xf32>
    %351 = vector.extract_strided_slice %350 {offsets = [0, 0], sizes = [8, 32], strides = [1, 1]} : vector<8x128xf32> to vector<8x32xf32>
    %352 = vector.extract_strided_slice %350 {offsets = [0, 32], sizes = [8, 32], strides = [1, 1]} : vector<8x128xf32> to vector<8x32xf32>
    %353 = vector.extract_strided_slice %350 {offsets = [0, 64], sizes = [8, 32], strides = [1, 1]} : vector<8x128xf32> to vector<8x32xf32>
    %cst_81 = arith.constant 2.000000e+00 : f32
    %354 = vector.broadcast %cst_81 : f32 to vector<8x32xf32>
    %355 = arith.mulf %354, %353 : vector<8x32xf32>
    %cst_82 = arith.constant 1.000000e+00 : f32
    %356 = vector.broadcast %cst_82 : f32 to vector<8x32xf32>
    %357 = arith.subf %355, %356 : vector<8x32xf32>
    %358 = vector.extract_strided_slice %350 {offsets = [0, 96], sizes = [8, 32], strides = [1, 1]} : vector<8x128xf32> to vector<8x32xf32>
    %359 = arith.mulf %352, %339 : vector<8x32xf32>
    %360 = arith.mulf %351, %357 : vector<8x32xf32>
    %361 = arith.addf %359, %360 : vector<8x32xf32>
    %362 = math.tanh %361 : vector<8x32xf32>
    %363 = arith.mulf %358, %362 : vector<8x32xf32>
    %c56 = arith.constant 56 : index
    %c0_83 = arith.constant 0 : index
    %364 = vector.load %arg9[%c56, %c0_83] : memref<64x32xf32, #tpu.memory_space<vmem>>, vector<8x32xf32>
    tpu.vector_store %arg9[%c56, %c0_83], %363 {strides = array<i32>} : memref<64x32xf32, #tpu.memory_space<vmem>>, vector<8x32xf32>,
    %c0_84 = arith.constant 0 : index
    %c0_85 = arith.constant 0 : index
    %365 = vector.load %arg9[%c0_84, %c0_85] : memref<64x32xf32, #tpu.memory_space<vmem>>, vector<64x32xf32>
    %c0_86 = arith.constant 0 : index
    %c0_87 = arith.constant 0 : index
    %366 = vector.load %arg4[%c0_86, %c0_87] : memref<32x2xf32, #tpu.memory_space<vmem>>, vector<32x2xf32>
    %cst_88 = arith.constant dense<0.000000e+00> : vector<64x2xf32>
    %367 = tpu.matmul %365, %366, %cst_88 {dimension_numbers = #tpu.dot_dimension_numbers<[1], [0], [0], [1], [0, 0, 1, 1], [], []>} : vector<64x32xf32>, vector<32x2xf32>, vector<64x2xf32> -> vector<64x2xf32>
    %c0_89 = arith.constant 0 : index
    %c0_90 = arith.constant 0 : index
    %368 = vector.load %arg5[%c0_89, %c0_90] : memref<1x2xf32, #tpu.memory_space<vmem>>, vector<1x2xf32>
    %369 = vector.broadcast %368 : vector<1x2xf32> to vector<64x2xf32>
    %370 = arith.addf %367, %369 : vector<64x2xf32>
    %c0_91 = arith.constant 0 : index
    %c0_92 = arith.constant 0 : index
    %371 = vector.load %arg6[%c0_91, %c0_92] : memref<64x2xf32, #tpu.memory_space<vmem>>, vector<64x2xf32>
    tpu.vector_store %arg6[%c0_91, %c0_92], %370 {strides = array<i32>} : memref<64x2xf32, #tpu.memory_space<vmem>>, vector<64x2xf32>,
    %c0_93 = arith.constant 0 : index
    %c0_94 = arith.constant 0 : index
    %372 = vector.load %arg7[%c0_93, %c0_94] : memref<8x32xf32, #tpu.memory_space<vmem>>, vector<8x32xf32>
    tpu.vector_store %arg7[%c0_93, %c0_94], %363 {strides = array<i32>} : memref<8x32xf32, #tpu.memory_space<vmem>>, vector<8x32xf32>,
    %c0_95 = arith.constant 0 : index
    %c0_96 = arith.constant 0 : index
    %373 = vector.load %arg8[%c0_95, %c0_96] : memref<8x32xf32, #tpu.memory_space<vmem>>, vector<8x32xf32>
    tpu.vector_store %arg8[%c0_95, %c0_96], %361 {strides = array<i32>} : memref<8x32xf32, #tpu.memory_space<vmem>>, vector<8x32xf32>,
    return
  }
}

</mosaic_0001>

<bundles_post_ra>
// kernel: tpu_custom_call.1
= control target key start
LH: loop header
LB: loop body
LE: loop exit
PB: predicated region body
PF: predicated region fallthrough
CT: control target
= control target key end

     0   :  { %14 = vsyncpa [#allocation4], 0  ;;  %vm40_vm0 = vcmask 31744   ;;  %s2431_s0 = inlined_call_operand.vmem [shape: f32[64,4], index: 0, kind: input, shape index: {}]   ;;  %s2432_s1 = inlined_call_operand.vmem [shape: f32[4,128], index: 1, kind: input, shape index: {}]   ;;  %s2433_s2 = inlined_call_operand.vmem [shape: f32[32,128], index: 2, kind: input, shape index: {}]   ;;  %s2434_s3 = inlined_call_operand.vmem [shape: f32[1,128], index: 3, kind: input, shape index: {}]   ;;  %s2435_s4 = inlined_call_operand.vmem [shape: f32[32,2], index: 4, kind: input, shape index: {}]   ;;  %s2436_s5 = inlined_call_operand.vmem [shape: f32[1,2], index: 5, kind: input, shape index: {}]   ;;  %s2437_s6 = inlined_call_operand.vmem [shape: f32[64,2], index: 6, kind: output, shape index: {0}]   ;;  %s2438_s7 = inlined_call_operand.hbm [shape: f32[8,32], index: 7, kind: output, shape index: {1}]   ;;  %s2439_s8 = inlined_call_operand.hbm [shape: f32[8,32], index: 8, kind: output, shape index: {2}]  }
   0x1   :  { %v28_v0 = vld [vmem:[%s2431_s0] sm:$0xff] }
   0x2   :  { %v41_v1 = vsel %vm40_vm0, %v28_v0, 0.0 }
   0x3   :  { %15 = vsyncpa [#allocation6], 0  ;;  %42 = vadd.xlane.f32.xlu0 %v41_v1  ;;  %v1953_v2 = vmov 4.0   ;;  %v29_v14 = vld [vmem:[%s2431_s0 + $0x8] sm:$0xff]  ;;  %v448_v16 = vld [vmem:[%s2432_s1] sm:$0xf] }
   0x4   :  { %1750 = vrcp.f32 %v1953_v2  ;;  %v44_v15 = vsel %vm40_vm0, %v29_v14, 0.0  ;;  %vm477_vm2 = vcmask 1043456   ;;  %v2030_v56 = vld [vmem:[%s2434_s3] ss:$0 sm:$0xff]  ;;  %s1954_s12 = smov 64   ;;  %s1955_s13 = smov 96  }
   0x5   :  { %45 = vadd.xlane.f32.xlu1 %v44_v15  ;;  %1670 = vmatpush.msk.msra.mxu0 %vm477_vm2, %v448_v16  ;;  %s1956_s22 = smov 32   ;;  %s1957_s23 = smov [#allocation3]  }
   0x6   :  { %s1958_s24 = smov [#allocation5]   ;;  %s1654_s27 = sshll.u32 %s2439_s8, 4  ;;  %s1655_s27 = int_to_ptr.hbm [resolvable:$true] %s1654_s27 }
   0x7   :  { %s1652_s25 = sshll.u32 %s1958_s24, 4  ;;  %s1653_s25 = int_to_ptr.vmem [resolvable:$true] %s1652_s25 }
   0xa   :  { %v1751_v3 = vpop.eup %1750 }
   0xb   :  { %v66_v4 = vmul.f32 4.0, %v1751_v3  ;;  %vm70_vm1 = vweird.f32 %v1751_v3 }
   0xd   :  { %v67_v5 = vsub.f32 1.0, %v66_v4 }
   0xf   :  { %v68_v6 = vmul.f32 %v1751_v3, %v67_v5 }
  0x11   :  { %v69_v7 = vadd.f32 %v1751_v3, %v68_v6 }
  0x13   :  { %v2008_v8 = vsel %vm70_vm1, %v1751_v3, %v69_v7 }
  0x76   :  { %v43_v9 = vpop.xlane.xlu0 %42 }
  0x77   :  { %v72_v10 = vmul.f32 %v2008_v8, %v43_v9 }
  0x78   :  { %v46_v51 = vpop.xlane.xlu1 %45 }
  0x79   :  { %v80_v11 = vsub.f32 %v28_v0, %v72_v10  ;;  %v73_v52 = vmul.f32 %v2008_v8, %v46_v51  ;;  %v2068_v51 = vld [vmem:[%s2433_s2] sm:$0xff] }
  0x7b   :  { %v88_v12 = vmul.f32 %v80_v11, %v80_v11  ;;  %v2022_v53 = vsub.f32 %v29_v14, %v73_v52 }
  0x7d   :  { %v96_v13 = vsel %vm40_vm0, %v88_v12, 0.0  ;;  %v89_v54 = vmul.f32 %v2022_v53, %v2022_v53 }
  0x7e   :  { %97 = vadd.xlane.f32.xlu0 %v96_v13 }
  0x7f   :  { %v99_v55 = vsel %vm40_vm0, %v89_v54, 0.0  ;;  %v30_v54 = vld [vmem:[%s2431_s0 + $0x10] sm:$0xff] }
  0x80   :  { %100 = vadd.xlane.f32.xlu2 %v99_v55  ;;  %v47_v55 = vsel %vm40_vm0, %v30_v54, 0.0 }
  0xf1   :  { %v98_v17 = vpop.xlane.xlu0 %97 }
  0xf2   :  { %v120_v18 = vmul.f32 %v98_v17, %v2008_v8 }
  0xf3   :  { %v101_v5 = vpop.xlane.xlu2 %100 }
  0xf4   :  { %1752 = vrsqrt.f32 %v120_v18  ;;  %vm135_vm3 = vcmp.eq.f32.partialorder %v120_v18, inf  ;;  %v138_v26 = vand.u32 2147483648, %v120_v18  ;;  %vm137_vm4 = vcmp.eq.f32.partialorder %v120_v18, 0.0 }
  0xf5   :  { %v121_v7 = vmul.f32 %v101_v5, %v2008_v8 }
  0xf7   :  { %vm147_vm15 = vcmp.eq.f32.partialorder %v121_v7, inf  ;;  %vm149_vm1 = vcmp.eq.f32.partialorder %v121_v7, 0.0 }
  0xfa   :  { %v1753_v19 = vpop.eup %1752 }
  0xfb   :  { %v129_v20 = vmul.f32 %v1753_v19, %v120_v18 }
  0xfd   :  { %v130_v21 = vmul.f32 %v1753_v19, %v129_v20 }
  0xff   :  { %v131_v22 = vmul.f32 0.5, %v130_v21 }
 0x101   :  { %v132_v23 = vsub.f32 1.5, %v131_v22 }
 0x103   :  { %v133_v24 = vmul.f32 %v1753_v19, %v132_v23  ;;  %v150_v19 = vand.u32 2147483648, %v121_v7 }
 0x105   :  { %v134_v25 = vmul.f32 %v133_v24, %v120_v18 }
 0x107   :  { %v136_v27 = vsel %vm135_vm3, %v120_v18, %v134_v25 }
 0x108   :  { %v139_v28 = vsel %vm137_vm4, %v138_v26, %v136_v27 }
 0x109   :  { %1754 = vrsqrt.f32 %v139_v28  ;;  %vm231_vm5 = vcmp.eq.f32.partialorder %v139_v28, inf  ;;  %v234_v36 = vand.u32 2147483648, %v139_v28  ;;  %vm233_vm6 = vcmp.eq.f32.partialorder %v139_v28, 0.0 }
 0x10f   :  { %v1755_v29 = vpop.eup %1754 }
 0x110   :  { %v225_v30 = vmul.f32 %v1755_v29, %v139_v28 }
 0x112   :  { %v226_v31 = vmul.f32 %v1755_v29, %v225_v30 }
 0x114   :  { %v227_v32 = vmul.f32 0.5, %v226_v31 }
 0x116   :  { %v228_v33 = vsub.f32 1.5, %v227_v32 }
 0x118   :  { %v229_v34 = vmul.f32 %v1755_v29, %v228_v33 }
 0x11a   :  { %v230_v35 = vmul.f32 %v229_v34, %v139_v28 }
 0x11c   :  { %v232_v37 = vsel %vm231_vm5, %v139_v28, %v230_v35 }
 0x11d   :  { %v235_v38 = vsel %vm233_vm6, %v234_v36, %v232_v37 }
 0x11e   :  { %v320_v39 = vadd.f32 1e-10, %v235_v38 }
 0x120   :  { %1756 = vrcp.f32 %v320_v39  ;;  %v339_v43 = vand.u32 2147483648, %v320_v39  ;;  %v337_v45 = vand.u32 2147483647, %v320_v39  ;;  %vm333_vm8 = vweird.f32 %v320_v39 }
 0x122   :  { %v340_v47 = vor.u32 1.1754944e-38, %v339_v43  ;;  %vm338_vm10 = vcmp.eq.f32.partialorder %v337_v45, 8.507059e+37 }
 0x126   :  { %v1757_v40 = vpop.eup %1756 }
 0x127   :  { %v329_v41 = vmul.f32 %v1757_v40, %v320_v39  ;;  %vm334_vm7 = vweird.f32 %v1757_v40 }
 0x128   :  { %vm335_vm9 = vmor %vm333_vm8, %vm334_vm7  ;;  %vm557_vm8 = vcmask 261120  }
 0x129   :  { %v330_v42 = vsub.f32 1.0, %v329_v41 }
 0x12b   :  { %v331_v44 = vmul.f32 %v1757_v40, %v330_v42 }
 0x12d   :  { %v332_v46 = vadd.f32 %v1757_v40, %v331_v44 }
 0x12f   :  { %v336_v48 = vsel %vm335_vm9, %v1757_v40, %v332_v46 }
 0x130   :  { %v341_v49 = vsel %vm338_vm10, %v340_v47, %v336_v48  ;;  %v2048_v48 = vld [vmem:[%s2433_s2 + $0x18] sm:$0xff] }
 0x131   :  { %v342_v50 = vmul.f32 %v341_v49, %v80_v11  ;;  %v2053_v49 = vld [vmem:[%s2433_s2 + $0x10] sm:$0xff]  ;;  %572 = vmatpush.msra.mxu1 %v2048_v48  ;;  %640 = vmatpush.msra.mxu2 %v2048_v48 }
 0x132   :  { %704 = vmatpush.msra.mxu3 %v2048_v48 }
 0x133   :  { %1671 = vmatmul.msk.f32.vlgmr.msra.gmra.mxu0 %vm40_vm0, %v342_v50  ;;  %v2060_v50 = vld [vmem:[%s2433_s2 + $0x8] sm:$0xff]  ;;  %573 = vmatpush.msra.mxu1 %v2053_v49 }
 0x134   :  { %641 = vmatpush.msra.mxu2 %v2053_v49  ;;  %705 = vmatpush.msra.mxu3 %v2053_v49 }
 0x135   :  { %574 = vmatpush.msra.mxu1 %v2060_v50 }
 0x136   :  { %642 = vmatpush.msra.mxu2 %v2060_v50  ;;  %706 = vmatpush.msra.mxu3 %v2060_v50 }
 0x137   :  { %575 = vmatpush.msra.mxu1 %v2068_v51 }
 0x138   :  { %643 = vmatpush.msra.mxu2 %v2068_v51  ;;  %707 = vmatpush.msra.mxu3 %v2068_v51 }
 0x139   :  { %768 = vmatpush.msrb.mxu1 %v2048_v48 }
 0x13a   :  { %832 = vmatpush.msrb.mxu2 %v2048_v48  ;;  %896 = vmatpush.msrb.mxu3 %v2048_v48 }
 0x13b   :  { %769 = vmatpush.msrb.mxu1 %v2053_v49 }
 0x13c   :  { %833 = vmatpush.msrb.mxu2 %v2053_v49  ;;  %897 = vmatpush.msrb.mxu3 %v2053_v49 }
 0x13d   :  { %770 = vmatpush.msrb.mxu1 %v2060_v50 }
 0x13e   :  { %834 = vmatpush.msrb.mxu2 %v2060_v50  ;;  %898 = vmatpush.msrb.mxu3 %v2060_v50 }
 0x13f   :  { %771 = vmatpush.msrb.mxu1 %v2068_v51 }
 0x140   :  { %835 = vmatpush.msrb.mxu2 %v2068_v51  ;;  %899 = vmatpush.msrb.mxu3 %v2068_v51 }
 0x1b0   :  { %v498_v57 = vpop.f32.mrf.mxu0 }
 0x1b1   :  { %v2033_v58 = vadd.f32 %v2030_v56, %v498_v57 }
 0x1b3   :  { %v1679_v59 = vmul.f32 -1.442695, %v2033_v58 }
 0x1b5   :  { %1758 = vpow2.f32 %v1679_v59 }
 0x1bb   :  { %v1759_v60 = vpop.eup %1758 }
 0x1bc   :  { %v525_v61 = vadd.f32 1.0, %v1759_v60 }
 0x1be   :  { %1760 = vrcp.f32 %v525_v61  ;;  %v537_v1 = vand.u32 2147483648, %v525_v61  ;;  %v535_v3 = vand.u32 2147483647, %v525_v61  ;;  %vm531_vm12 = vweird.f32 %v525_v61 }
 0x1bf   :  { %1762 = vrsqrt.f32 %v121_v7 }
 0x1c0   :  { %v538_v6 = vor.u32 1.1754944e-38, %v537_v1  ;;  %vm536_vm14 = vcmp.eq.f32.partialorder %v535_v3, 8.507059e+37 }
 0x1c4   :  { %v1761_v62 = vpop.eup %1760 }
 0x1c5   :  { %v527_v63 = vmul.f32 %v1761_v62, %v525_v61  ;;  %vm532_vm11 = vweird.f32 %v1761_v62  ;;  %v1763_v13 = vpop.eup %1762 }
 0x1c6   :  { %vm533_vm13 = vmor %vm531_vm12, %vm532_vm11  ;;  %v141_v14 = vmul.f32 %v1763_v13, %v121_v7 }
 0x1c7   :  { %v528_v0 = vsub.f32 1.0, %v527_v63 }
 0x1c8   :  { %v142_v15 = vmul.f32 %v1763_v13, %v141_v14 }
 0x1c9   :  { %v529_v2 = vmul.f32 %v1761_v62, %v528_v0 }
 0x1ca   :  { %v143_v16 = vmul.f32 0.5, %v142_v15 }
 0x1cb   :  { %v530_v4 = vadd.f32 %v1761_v62, %v529_v2 }
 0x1cc   :  { %v144_v17 = vsub.f32 1.5, %v143_v16 }
 0x1cd   :  { %v534_v9 = vsel %vm533_vm13, %v1761_v62, %v530_v4 }
 0x1ce   :  { %v2037_v10 = vsel %vm536_vm14, %v538_v6, %v534_v9  ;;  %v145_v18 = vmul.f32 %v1763_v13, %v144_v17 }
 0x1cf   :  { %v541_v11 = vmul.f32 2.0, %v2037_v10 }
 0x1d0   :  { %v146_v20 = vmul.f32 %v145_v18, %v121_v7 }
 0x1d1   :  { %v1680_v12 = vadd.f32 -1.0, %v541_v11 }
 0x1d2   :  { %v148_v21 = vsel %vm147_vm15, %v121_v7, %v146_v20 }
 0x1d3   :  { %544 = vrot.lane.b32.xlu1 %v1680_v12, %s1954_s12  ;;  %v151_v22 = vsel %vm149_vm1, %v150_v19, %v148_v21 }
 0x1d4   :  { %1764 = vrsqrt.f32 %v151_v22  ;;  %vm243_vm2 = vcmp.eq.f32.partialorder %v151_v22, inf  ;;  %v246_v29 = vand.u32 2147483648, %v151_v22  ;;  %vm245_vm3 = vcmp.eq.f32.partialorder %v151_v22, 0.0 }
 0x1da   :  { %v1765_v23 = vpop.eup %1764 }
 0x1db   :  { %v237_v24 = vmul.f32 %v1765_v23, %v151_v22 }
 0x1dd   :  { %v238_v25 = vmul.f32 %v1765_v23, %v237_v24 }
 0x1df   :  { %v239_v26 = vmul.f32 0.5, %v238_v25 }
 0x1e1   :  { %v240_v27 = vsub.f32 1.5, %v239_v26 }
 0x1e3   :  { %v241_v28 = vmul.f32 %v1765_v23, %v240_v27 }
 0x1e5   :  { %v242_v30 = vmul.f32 %v241_v28, %v151_v22 }
 0x1e7   :  { %v244_v31 = vsel %vm243_vm2, %v151_v22, %v242_v30 }
 0x1e8   :  { %v247_v32 = vsel %vm245_vm3, %v246_v29, %v244_v31 }
 0x1e9   :  { %v321_v33 = vadd.f32 1e-10, %v247_v32 }
 0x1eb   :  { %1766 = vrcp.f32 %v321_v33  ;;  %v354_v36 = vand.u32 2147483648, %v321_v33  ;;  %vm348_vm4 = vweird.f32 %v321_v33  ;;  %v352_v38 = vand.u32 2147483647, %v321_v33 }
 0x1ed   :  { %v355_v40 = vor.u32 1.1754944e-38, %v354_v36  ;;  %vm353_vm7 = vcmp.eq.f32.partialorder %v352_v38, 8.507059e+37 }
 0x1f1   :  { %v1767_v34 = vpop.eup %1766 }
 0x1f2   :  { %v344_v35 = vmul.f32 %v1767_v34, %v321_v33  ;;  %vm349_vm5 = vweird.f32 %v1767_v34 }
 0x1f3   :  { %vm350_vm6 = vmor %vm348_vm4, %vm349_vm5 }
 0x1f4   :  { %v345_v37 = vsub.f32 1.0, %v344_v35 }
 0x1f6   :  { %v346_v39 = vmul.f32 %v1767_v34, %v345_v37 }
 0x1f8   :  { %v347_v41 = vadd.f32 %v1767_v34, %v346_v39 }
 0x1fa   :  { %v351_v42 = vsel %vm350_vm6, %v1767_v34, %v347_v41 }
 0x1fb   :  { %v356_v43 = vsel %vm353_vm7, %v355_v40, %v351_v42 }
 0x1fc   :  { %v357_v44 = vmul.f32 %v356_v43, %v2022_v53 }
 0x1fd   :  { %48 = vadd.xlane.f32.xlu1 %v47_v55 }
 0x1fe   :  { %1672 = vmatmul.msk.f32.gmra.mxu0 %vm40_vm0, %v357_v44 }
 0x245   :  { %v545_v45 = vpop.permute.xlu1 %544 }
 0x246   :  { %v547_v46 = vmul.f32 %v545_v45, %v2037_v10 }
 0x248   :  { %1768 = vtanh.f32 %v547_v46 }
 0x24e   :  { %v1769_v47 = vpop.eup %1768 }
 0x24f   :  { %550 = vrot.lane.b32.xlu2 %v1769_v47, %s1955_s13 }
 0x270   :  { %v49_v0 = vpop.xlane.xlu1 %48 }
 0x271   :  { %v74_v1 = vmul.f32 %v2008_v8, %v49_v0 }
 0x273   :  { %v2106_v2 = vsub.f32 %v30_v54, %v74_v1 }
 0x275   :  { %v90_v3 = vmul.f32 %v2106_v2, %v2106_v2 }
 0x277   :  { %v102_v4 = vsel %vm40_vm0, %v90_v3, 0.0 }
 0x27b   :  { %v501_v59 = vpop.f32.mrf.mxu0 }
 0x27c   :  { %v2102_v60 = vadd.f32 %v2030_v56, %v501_v59 }
 0x2a9   :  { %v551_v52 = vpop.permute.xlu2 %550 }
 0x2aa   :  { %v553_v53 = vmul.f32 %v551_v52, %v2037_v10 }
 0x2ac   :  { %555 = vrot.lane.b32.xlu0 %v553_v53, %s1956_s22 }
 0x2b4   :  { %603 = vrot.lane.b32.xlu0 %v547_v46, %s1956_s22 }
 0x2de   :  { %103 = vadd.xlane.f32.xlu0 %v102_v4 }
 0x31e   :  { %v556_v57 = vpop.permute.xlu0 %555 }
 0x31f   :  { %1681 = vmatmul.msk.f32.vlgmr.msra.gmra.mxu1 %vm557_vm8, %v556_v57 }
 0x320   :  { %960 = vmatpush.msra.mxu1 %v2048_v48 }
 0x322   :  { %961 = vmatpush.msra.mxu1 %v2053_v49 }
 0x324   :  { %962 = vmatpush.msra.mxu1 %v2060_v50 }
 0x326   :  { %963 = vmatpush.msra.mxu1 %v2068_v51  ;;  %v604_v20 = vpop.permute.xlu0 %603 }
 0x351   :  { %v104_v23 = vpop.xlane.xlu0 %103 }
 0x352   :  { %v122_v24 = vmul.f32 %v104_v23, %v2008_v8 }
 0x354   :  { %vm159_vm13 = vcmp.eq.f32.partialorder %v122_v24, inf  ;;  %v162_v32 = vand.u32 2147483648, %v122_v24  ;;  %vm161_vm14 = vcmp.eq.f32.partialorder %v122_v24, 0.0 }
 0x39c   :  { %v577_v61 = vpop.f32.mrf.mxu1 }
 0x39d   :  { %v580_v62 = vadd.f32 %v577_v61, %v2102_v60 }
 0x39f   :  { %v1682_v63 = vmul.f32 -1.442695, %v580_v62 }
 0x3a1   :  { %1770 = vpow2.f32 %v1682_v63 }
 0x3a7   :  { %v1771_v5 = vpop.eup %1770 }
 0x3a8   :  { %v584_v6 = vadd.f32 1.0, %v1771_v5 }
 0x3aa   :  { %1772 = vrcp.f32 %v584_v6  ;;  %v596_v11 = vand.u32 2147483648, %v584_v6  ;;  %v594_v13 = vand.u32 2147483647, %v584_v6  ;;  %vm590_vm10 = vweird.f32 %v584_v6 }
 0x3ab   :  { %1774 = vrsqrt.f32 %v122_v24 }
 0x3ac   :  { %v597_v15 = vor.u32 1.1754944e-38, %v596_v11  ;;  %vm595_vm12 = vcmp.eq.f32.partialorder %v594_v13, 8.507059e+37 }
 0x3b0   :  { %v1773_v7 = vpop.eup %1772 }
 0x3b1   :  { %v586_v9 = vmul.f32 %v1773_v7, %v584_v6  ;;  %vm591_vm9 = vweird.f32 %v1773_v7  ;;  %v1775_v25 = vpop.eup %1774 }
 0x3b2   :  { %vm592_vm11 = vmor %vm590_vm10, %vm591_vm9  ;;  %v153_v26 = vmul.f32 %v1775_v25, %v122_v24 }
 0x3b3   :  { %v587_v10 = vsub.f32 1.0, %v586_v9 }
 0x3b4   :  { %v154_v27 = vmul.f32 %v1775_v25, %v153_v26 }
 0x3b5   :  { %v588_v12 = vmul.f32 %v1773_v7, %v587_v10 }
 0x3b6   :  { %v155_v28 = vmul.f32 0.5, %v154_v27  ;;  %v31_v27 = vld [vmem:[%s2431_s0 + $0x18] sm:$0xff] }
 0x3b7   :  { %v589_v14 = vadd.f32 %v1773_v7, %v588_v12 }
 0x3b8   :  { %v156_v29 = vsub.f32 1.5, %v155_v28  ;;  %v50_v28 = vsel %vm40_vm0, %v31_v27, 0.0 }
 0x3b9   :  { %v593_v16 = vsel %vm592_vm11, %v1773_v7, %v589_v14 }
 0x3ba   :  { %v598_v17 = vsel %vm595_vm12, %v597_v15, %v593_v16  ;;  %v157_v30 = vmul.f32 %v1775_v25, %v156_v29 }
 0x3bb   :  { %v600_v18 = vmul.f32 2.0, %v598_v17  ;;  %v606_v0 = vmul.f32 %v604_v20, %v598_v17 }
 0x3bc   :  { %v158_v31 = vmul.f32 %v157_v30, %v122_v24 }
 0x3bd   :  { %v1683_v19 = vadd.f32 -1.0, %v600_v18 }
 0x3be   :  { %v160_v33 = vsel %vm159_vm13, %v122_v24, %v158_v31 }
 0x3bf   :  { %608 = vrot.lane.b32.xlu2 %v1683_v19, %s1954_s12  ;;  %v163_v34 = vsel %vm161_vm14, %v162_v32, %v160_v33 }
 0x3c0   :  { %1776 = vrsqrt.f32 %v163_v34  ;;  %vm255_vm15 = vcmp.eq.f32.partialorder %v163_v34, inf  ;;  %v258_v42 = vand.u32 2147483648, %v163_v34  ;;  %vm257_vm1 = vcmp.eq.f32.partialorder %v163_v34, 0.0 }
 0x3c6   :  { %v1777_v35 = vpop.eup %1776 }
 0x3c7   :  { %v249_v36 = vmul.f32 %v1777_v35, %v163_v34 }
 0x3c9   :  { %v250_v37 = vmul.f32 %v1777_v35, %v249_v36 }
 0x3cb   :  { %v251_v38 = vmul.f32 0.5, %v250_v37 }
 0x3cd   :  { %v252_v39 = vsub.f32 1.5, %v251_v38 }
 0x3cf   :  { %v253_v40 = vmul.f32 %v1777_v35, %v252_v39 }
 0x3d1   :  { %v254_v41 = vmul.f32 %v253_v40, %v163_v34 }
 0x3d3   :  { %v256_v43 = vsel %vm255_vm15, %v163_v34, %v254_v41 }
 0x3d4   :  { %v259_v44 = vsel %vm257_vm1, %v258_v42, %v256_v43 }
 0x3d5   :  { %v322_v45 = vadd.f32 1e-10, %v259_v44 }
 0x3d7   :  { %1778 = vrcp.f32 %v322_v45  ;;  %v369_v54 = vand.u32 2147483648, %v322_v45  ;;  %vm363_vm2 = vweird.f32 %v322_v45  ;;  %v367_v57 = vand.u32 2147483647, %v322_v45 }
 0x3d9   :  { %v370_v59 = vor.u32 1.1754944e-38, %v369_v54  ;;  %vm368_vm5 = vcmp.eq.f32.partialorder %v367_v57, 8.507059e+37 }
 0x3dd   :  { %v1779_v46 = vpop.eup %1778 }
 0x3de   :  { %v359_v47 = vmul.f32 %v1779_v46, %v322_v45  ;;  %vm364_vm3 = vweird.f32 %v1779_v46 }
 0x3df   :  { %vm365_vm4 = vmor %vm363_vm2, %vm364_vm3 }
 0x3e0   :  { %v360_v52 = vsub.f32 1.0, %v359_v47 }
 0x3e2   :  { %v361_v53 = vmul.f32 %v1779_v46, %v360_v52 }
 0x3e4   :  { %v362_v55 = vadd.f32 %v1779_v46, %v361_v53 }
 0x3e6   :  { %v366_v61 = vsel %vm365_vm4, %v1779_v46, %v362_v55 }
 0x3e7   :  { %v371_v62 = vsel %vm368_vm5, %v370_v59, %v366_v61 }
 0x3e8   :  { %v372_v63 = vmul.f32 %v371_v62, %v2106_v2 }
 0x3ea   :  { %1673 = vmatmul.msk.f32.gmra.mxu0 %vm40_vm0, %v372_v63 }
 0x419   :  { %v609_v21 = vpop.permute.xlu2 %608 }
 0x41a   :  { %v611_v22 = vmul.f32 %v609_v21, %v598_v17 }
 0x41c   :  { %613 = vrot.lane.b32.xlu2 %v611_v22, %s1956_s22 }
 0x467   :  { %v504_v2 = vpop.f32.mrf.mxu0 }
 0x468   :  { %v2124_v9 = vadd.f32 %v2030_v56, %v504_v2 }
 0x476   :  { %v614_v1 = vpop.permute.xlu2 %613 }
 0x477   :  { %v616_v3 = vadd.f32 %v614_v1, %v606_v0 }
 0x479   :  { %1780 = vtanh.f32 %v616_v3 }
 0x47f   :  { %v1781_v4 = vpop.eup %1780 }
 0x480   :  { %619 = vrot.lane.b32.xlu2 %v1781_v4, %s1954_s12 }
 0x4da   :  { %v620_v5 = vpop.permute.xlu2 %619 }
 0x4db   :  { %v622_v6 = vmul.f32 %v620_v5, %v598_v17 }
 0x4dd   :  { %624 = vrot.lane.b32.xlu2 %v622_v6, %s1956_s22 }
 0x537   :  { %v625_v7 = vpop.permute.xlu2 %624 }
 0x538   :  { %1684 = vmatmul.msk.f32.vlgmr.msra.gmra.mxu2 %vm557_vm8, %v625_v7 }
 0x539   :  { %1024 = vmatpush.msra.mxu2 %v2048_v48 }
 0x53b   :  { %1025 = vmatpush.msra.mxu2 %v2053_v49 }
 0x53d   :  { %1026 = vmatpush.msra.mxu2 %v2060_v50 }
 0x53f   :  { %1027 = vmatpush.msra.mxu2 %v2068_v51 }
 0x5bb   :  { %v645_v10 = vpop.f32.mrf.mxu2 }
 0x5bc   :  { %v648_v11 = vadd.f32 %v645_v10, %v2124_v9 }
 0x5be   :  { %v1685_v12 = vmul.f32 -1.442695, %v648_v11 }
 0x5c0   :  { %1782 = vpow2.f32 %v1685_v12 }
 0x5c6   :  { %v1783_v13 = vpop.eup %1782 }
 0x5c7   :  { %v652_v14 = vadd.f32 1.0, %v1783_v13 }
 0x5c9   :  { %1784 = vrcp.f32 %v652_v14  ;;  %v664_v18 = vand.u32 2147483648, %v652_v14  ;;  %v662_v20 = vand.u32 2147483647, %v652_v14  ;;  %vm658_vm7 = vweird.f32 %v652_v14 }
 0x5cb   :  { %v665_v22 = vor.u32 1.1754944e-38, %v664_v18  ;;  %vm663_vm10 = vcmp.eq.f32.partialorder %v662_v20, 8.507059e+37 }
 0x5cf   :  { %v1785_v15 = vpop.eup %1784 }
 0x5d0   :  { %v654_v16 = vmul.f32 %v1785_v15, %v652_v14  ;;  %vm659_vm6 = vweird.f32 %v1785_v15 }
 0x5d1   :  { %vm660_vm9 = vmor %vm658_vm7, %vm659_vm6 }
 0x5d2   :  { %v655_v17 = vsub.f32 1.0, %v654_v16 }
 0x5d4   :  { %v656_v19 = vmul.f32 %v1785_v15, %v655_v17 }
 0x5d6   :  { %v657_v21 = vadd.f32 %v1785_v15, %v656_v19 }
 0x5d8   :  { %v661_v23 = vsel %vm660_vm9, %v1785_v15, %v657_v21  ;;  %v32_v21 = vld [vmem:[%s2431_s0 + $0x20] sm:$0xff] }
 0x5d9   :  { %v666_v24 = vsel %vm663_vm10, %v665_v22, %v661_v23  ;;  %v53_v22 = vsel %vm40_vm0, %v32_v21, 0.0 }
 0x5da   :  { %v668_v25 = vmul.f32 2.0, %v666_v24  ;;  %v670_v36 = vmul.f32 %v666_v24, %v616_v3 }
 0x5dc   :  { %v1686_v26 = vadd.f32 -1.0, %v668_v25 }
 0x5de   :  { %672 = vrot.lane.b32.xlu2 %v1686_v26, %s1954_s12 }
 0x607   :  { %51 = vadd.xlane.f32.xlu2 %v50_v28 }
 0x60f   :  { %54 = vadd.xlane.f32.xlu2 %v53_v22 }
 0x638   :  { %v673_v29 = vpop.permute.xlu2 %672 }
 0x639   :  { %v675_v30 = vmul.f32 %v673_v29, %v666_v24 }
 0x63b   :  { %677 = vrot.lane.b32.xlu1 %v675_v30, %s1956_s22 }
 0x67a   :  { %v52_v31 = vpop.xlane.xlu2 %51 }
 0x67b   :  { %v75_v32 = vmul.f32 %v2008_v8, %v52_v31 }
 0x67d   :  { %v83_v33 = vsub.f32 %v31_v27, %v75_v32 }
 0x67f   :  { %v91_v34 = vmul.f32 %v83_v33, %v83_v33 }
 0x681   :  { %v105_v35 = vsel %vm40_vm0, %v91_v34, 0.0 }
 0x682   :  { %106 = vadd.xlane.f32.xlu0 %v105_v35 }
 0x6ad   :  { %v678_v37 = vpop.permute.xlu1 %677 }
 0x6ae   :  { %v2135_v38 = vadd.f32 %v678_v37, %v670_v36 }
 0x6b0   :  { %1786 = vtanh.f32 %v2135_v38 }
 0x6b6   :  { %v1787_v39 = vpop.eup %1786 }
 0x6b7   :  { %683 = vrot.lane.b32.xlu0 %v1787_v39, %s1954_s12 }
 0x6f5   :  { %v107_v40 = vpop.xlane.xlu0 %106 }
 0x6f6   :  { %v123_v41 = vmul.f32 %v107_v40, %v2008_v8 }
 0x6f8   :  { %1788 = vrsqrt.f32 %v123_v41  ;;  %vm171_vm11 = vcmp.eq.f32.partialorder %v123_v41, inf  ;;  %v174_v52 = vand.u32 2147483648, %v123_v41  ;;  %vm173_vm12 = vcmp.eq.f32.partialorder %v123_v41, 0.0 }
 0x6fe   :  { %v1789_v42 = vpop.eup %1788 }
 0x6ff   :  { %v165_v43 = vmul.f32 %v1789_v42, %v123_v41 }
 0x701   :  { %v166_v44 = vmul.f32 %v1789_v42, %v165_v43 }
 0x703   :  { %v167_v45 = vmul.f32 0.5, %v166_v44  ;;  %v55_v44 = vpop.xlane.xlu2 %54 }
 0x705   :  { %v168_v46 = vsub.f32 1.5, %v167_v45  ;;  %v76_v45 = vmul.f32 %v2008_v8, %v55_v44 }
 0x707   :  { %v169_v47 = vmul.f32 %v1789_v42, %v168_v46  ;;  %v84_v46 = vsub.f32 %v32_v21, %v76_v45 }
 0x709   :  { %v170_v53 = vmul.f32 %v169_v47, %v123_v41  ;;  %v92_v47 = vmul.f32 %v84_v46, %v84_v46 }
 0x70b   :  { %v172_v54 = vsel %vm171_vm11, %v123_v41, %v170_v53 }
 0x70c   :  { %v175_v55 = vsel %vm173_vm12, %v174_v52, %v172_v54  ;;  %v108_v52 = vsel %vm40_vm0, %v92_v47, 0.0 }
 0x70d   :  { %1790 = vrsqrt.f32 %v175_v55  ;;  %vm267_vm13 = vcmp.eq.f32.partialorder %v175_v55, inf  ;;  %v270_v3 = vand.u32 2147483648, %v175_v55  ;;  %vm269_vm14 = vcmp.eq.f32.partialorder %v175_v55, 0.0 }
 0x713   :  { %v1791_v57 = vpop.eup %1790 }
 0x714   :  { %v261_v59 = vmul.f32 %v1791_v57, %v175_v55 }
 0x716   :  { %v262_v61 = vmul.f32 %v1791_v57, %v261_v59 }
 0x718   :  { %v263_v62 = vmul.f32 0.5, %v262_v61 }
 0x71a   :  { %v264_v63 = vsub.f32 1.5, %v263_v62 }
 0x71c   :  { %v265_v0 = vmul.f32 %v1791_v57, %v264_v63 }
 0x71e   :  { %v266_v1 = vmul.f32 %v265_v0, %v175_v55 }
 0x720   :  { %v268_v4 = vsel %vm267_vm13, %v175_v55, %v266_v1 }
 0x721   :  { %v271_v5 = vsel %vm269_vm14, %v270_v3, %v268_v4 }
 0x722   :  { %v323_v6 = vadd.f32 1e-10, %v271_v5 }
 0x724   :  { %1792 = vrcp.f32 %v323_v6  ;;  %v384_v13 = vand.u32 2147483648, %v323_v6  ;;  %v382_v15 = vand.u32 2147483647, %v323_v6  ;;  %vm378_vm1 = vweird.f32 %v323_v6 }
 0x726   :  { %v385_v17 = vor.u32 1.1754944e-38, %v384_v13  ;;  %vm383_vm3 = vcmp.eq.f32.partialorder %v382_v15, 8.507059e+37 }
 0x729   :  { %v684_v7 = vpop.permute.xlu0 %683 }
 0x72a   :  { %v1793_v2 = vpop.eup %1792  ;;  %v686_v10 = vmul.f32 %v684_v7, %v666_v24 }
 0x72b   :  { %v374_v11 = vmul.f32 %v1793_v2, %v323_v6  ;;  %vm379_vm15 = vweird.f32 %v1793_v2 }
 0x72c   :  { %688 = vrot.lane.b32.xlu1 %v686_v10, %s1956_s22  ;;  %vm380_vm2 = vmor %vm378_vm1, %vm379_vm15 }
 0x72d   :  { %v375_v12 = vsub.f32 1.0, %v374_v11 }
 0x72f   :  { %v376_v14 = vmul.f32 %v1793_v2, %v375_v12 }
 0x731   :  { %v377_v16 = vadd.f32 %v1793_v2, %v376_v14 }
 0x733   :  { %v381_v18 = vsel %vm380_vm2, %v1793_v2, %v377_v16 }
 0x734   :  { %v386_v19 = vsel %vm383_vm3, %v385_v17, %v381_v18 }
 0x735   :  { %v387_v20 = vmul.f32 %v386_v19, %v83_v33 }
 0x737   :  { %1674 = vmatmul.msk.f32.gmra.mxu0 %vm40_vm0, %v387_v20 }
 0x79e   :  { %v689_v23 = vpop.permute.xlu1 %688 }
 0x79f   :  { %1687 = vmatmul.msk.f32.vlgmr.msra.gmra.mxu3 %vm557_vm8, %v689_v23 }
 0x7a0   :  { %1090 = vmatpush.msra.mxu3 %v2048_v48 }
 0x7a2   :  { %1091 = vmatpush.msra.mxu3 %v2053_v49 }
 0x7a4   :  { %1092 = vmatpush.msra.mxu3 %v2060_v50 }
 0x7a6   :  { %1093 = vmatpush.msra.mxu3 %v2068_v51 }
 0x7b4   :  { %v507_v24 = vpop.f32.mrf.mxu0 }
 0x7b5   :  { %v2152_v25 = vadd.f32 %v2030_v56, %v507_v24 }
 0x822   :  { %v709_v26 = vpop.f32.mrf.mxu3 }
 0x823   :  { %v712_v27 = vadd.f32 %v709_v26, %v2152_v25 }
 0x825   :  { %v1688_v28 = vmul.f32 -1.442695, %v712_v27 }
 0x827   :  { %1794 = vpow2.f32 %v1688_v28 }
 0x82d   :  { %v1795_v29 = vpop.eup %1794 }
 0x82e   :  { %v716_v30 = vadd.f32 1.0, %v1795_v29 }
 0x830   :  { %1796 = vrcp.f32 %v716_v30  ;;  %v728_v34 = vand.u32 2147483648, %v716_v30  ;;  %v726_v36 = vand.u32 2147483647, %v716_v30  ;;  %vm722_vm5 = vweird.f32 %v716_v30 }
 0x832   :  { %v729_v39 = vor.u32 1.1754944e-38, %v728_v34  ;;  %vm727_vm7 = vcmp.eq.f32.partialorder %v726_v36, 8.507059e+37 }
 0x836   :  { %v1797_v31 = vpop.eup %1796 }
 0x837   :  { %v718_v32 = vmul.f32 %v1797_v31, %v716_v30  ;;  %vm723_vm4 = vweird.f32 %v1797_v31 }
 0x838   :  { %vm724_vm6 = vmor %vm722_vm5, %vm723_vm4 }
 0x839   :  { %v719_v33 = vsub.f32 1.0, %v718_v32 }
 0x83b   :  { %v720_v35 = vmul.f32 %v1797_v31, %v719_v33 }
 0x83d   :  { %v721_v37 = vadd.f32 %v1797_v31, %v720_v35 }
 0x83f   :  { %v725_v40 = vsel %vm724_vm6, %v1797_v31, %v721_v37 }
 0x840   :  { %v2155_v41 = vsel %vm727_vm7, %v729_v39, %v725_v40 }
 0x841   :  { %v732_v42 = vmul.f32 2.0, %v2155_v41  ;;  %v734_v29 = vmul.f32 %v2155_v41, %v2135_v38 }
 0x843   :  { %v1689_v43 = vadd.f32 -1.0, %v732_v42 }
 0x845   :  { %736 = vrot.lane.b32.xlu1 %v1689_v43, %s1954_s12 }
 0x86f   :  { %109 = vadd.xlane.f32.xlu1 %v108_v52 }
 0x8b7   :  { %v737_v53 = vpop.permute.xlu1 %736 }
 0x8b8   :  { %v739_v54 = vmul.f32 %v737_v53, %v2155_v41 }
 0x8ba   :  { %741 = vrot.lane.b32.xlu0 %v739_v54, %s1956_s22 }
 0x8e2   :  { %v110_v55 = vpop.xlane.xlu1 %109 }
 0x8e3   :  { %v124_v57 = vmul.f32 %v110_v55, %v2008_v8 }
 0x8e5   :  { %1798 = vrsqrt.f32 %v124_v57  ;;  %vm183_vm9 = vcmp.eq.f32.partialorder %v124_v57, inf  ;;  %v186_v4 = vand.u32 2147483648, %v124_v57  ;;  %vm185_vm10 = vcmp.eq.f32.partialorder %v124_v57, 0.0 }
 0x8eb   :  { %v1799_v59 = vpop.eup %1798 }
 0x8ec   :  { %v177_v61 = vmul.f32 %v1799_v59, %v124_v57 }
 0x8ee   :  { %v178_v62 = vmul.f32 %v1799_v59, %v177_v61 }
 0x8f0   :  { %v179_v63 = vmul.f32 0.5, %v178_v62 }
 0x8f2   :  { %v180_v0 = vsub.f32 1.5, %v179_v63  ;;  %v33_v63 = vld [vmem:[%s2431_s0 + $0x28] sm:$0xff] }
 0x8f4   :  { %v181_v1 = vmul.f32 %v1799_v59, %v180_v0  ;;  %v56_v0 = vsel %vm40_vm0, %v33_v63, 0.0 }
 0x8f6   :  { %v182_v3 = vmul.f32 %v181_v1, %v124_v57 }
 0x8f8   :  { %v184_v5 = vsel %vm183_vm9, %v124_v57, %v182_v3 }
 0x8f9   :  { %v187_v6 = vsel %vm185_vm10, %v186_v4, %v184_v5 }
 0x8fa   :  { %1800 = vrsqrt.f32 %v187_v6  ;;  %vm279_vm11 = vcmp.eq.f32.partialorder %v187_v6, inf  ;;  %vm281_vm12 = vcmp.eq.f32.partialorder %v187_v6, 0.0  ;;  %v282_v15 = vand.u32 2147483648, %v187_v6 }
 0x900   :  { %v1801_v7 = vpop.eup %1800 }
 0x901   :  { %v273_v2 = vmul.f32 %v1801_v7, %v187_v6 }
 0x903   :  { %v274_v10 = vmul.f32 %v1801_v7, %v273_v2 }
 0x905   :  { %v275_v11 = vmul.f32 0.5, %v274_v10 }
 0x907   :  { %v276_v12 = vsub.f32 1.5, %v275_v11 }
 0x909   :  { %v277_v13 = vmul.f32 %v1801_v7, %v276_v12 }
 0x90b   :  { %v278_v14 = vmul.f32 %v277_v13, %v187_v6 }
 0x90d   :  { %v280_v16 = vsel %vm279_vm11, %v187_v6, %v278_v14 }
 0x90e   :  { %v283_v17 = vsel %vm281_vm12, %v282_v15, %v280_v16 }
 0x90f   :  { %v324_v18 = vadd.f32 1e-10, %v283_v17 }
 0x911   :  { %1802 = vrcp.f32 %v324_v18  ;;  %v399_v21 = vand.u32 2147483648, %v324_v18  ;;  %vm393_vm13 = vweird.f32 %v324_v18  ;;  %v397_v23 = vand.u32 2147483647, %v324_v18 }
 0x913   :  { %v400_v26 = vor.u32 1.1754944e-38, %v399_v21  ;;  %vm398_vm1 = vcmp.eq.f32.partialorder %v397_v23, 8.507059e+37 }
 0x917   :  { %v1803_v19 = vpop.eup %1802 }
 0x918   :  { %v389_v20 = vmul.f32 %v1803_v19, %v324_v18  ;;  %vm394_vm14 = vweird.f32 %v1803_v19 }
 0x919   :  { %vm395_vm15 = vmor %vm393_vm13, %vm394_vm14 }
 0x91a   :  { %v390_v22 = vsub.f32 1.0, %v389_v20 }
 0x91c   :  { %v391_v24 = vmul.f32 %v1803_v19, %v390_v22 }
 0x91e   :  { %v392_v27 = vadd.f32 %v1803_v19, %v391_v24 }
 0x920   :  { %v396_v28 = vsel %vm395_vm15, %v1803_v19, %v392_v27 }
 0x921   :  { %v401_v30 = vsel %vm398_vm1, %v400_v26, %v396_v28 }
 0x922   :  { %v402_v32 = vmul.f32 %v401_v30, %v84_v46 }
 0x924   :  { %1675 = vmatmul.msk.f32.gmra.mxu0 %vm40_vm0, %v402_v32 }
 0x92c   :  { %v742_v31 = vpop.permute.xlu0 %741 }
 0x92d   :  { %v744_v33 = vadd.f32 %v742_v31, %v734_v29 }
 0x92f   :  { %1804 = vtanh.f32 %v744_v33 }
 0x935   :  { %v1805_v34 = vpop.eup %1804 }
 0x936   :  { %747 = vrot.lane.b32.xlu2 %v1805_v34, %s1954_s12 }
 0x990   :  { %v748_v35 = vpop.permute.xlu2 %747 }
 0x991   :  { %v750_v36 = vmul.f32 %v748_v35, %v2155_v41 }
 0x993   :  { %752 = vrot.lane.b32.xlu0 %v750_v36, %s1956_s22 }
 0x9a1   :  { %v510_v38 = vpop.f32.mrf.mxu0 }
 0x9a2   :  { %v2176_v39 = vadd.f32 %v2030_v56, %v510_v38 }
 0xa05   :  { %v753_v37 = vpop.permute.xlu0 %752 }
 0xa06   :  { %1690 = vmatmul.msk.f32.vlgmr.msrb.gmra.mxu1 %vm557_vm8, %v753_v37 }
 0xa07   :  { %1156 = vmatpush.msrb.mxu1 %v2048_v48 }
 0xa09   :  { %1157 = vmatpush.msrb.mxu1 %v2053_v49 }
 0xa0b   :  { %1158 = vmatpush.msrb.mxu1 %v2060_v50 }
 0xa0d   :  { %1159 = vmatpush.msrb.mxu1 %v2068_v51 }
 0xa83   :  { %v773_v40 = vpop.f32.mrf.mxu1 }
 0xa84   :  { %v776_v41 = vadd.f32 %v773_v40, %v2176_v39 }
 0xa86   :  { %v1691_v42 = vmul.f32 -1.442695, %v776_v41 }
 0xa88   :  { %1806 = vpow2.f32 %v1691_v42 }
 0xa8e   :  { %v1807_v43 = vpop.eup %1806 }
 0xa8f   :  { %v780_v44 = vadd.f32 1.0, %v1807_v43 }
 0xa91   :  { %1808 = vrcp.f32 %v780_v44  ;;  %v792_v52 = vand.u32 2147483648, %v780_v44  ;;  %v790_v54 = vand.u32 2147483647, %v780_v44  ;;  %vm786_vm3 = vweird.f32 %v780_v44 }
 0xa93   :  { %v793_v56 = vor.u32 1.1754944e-38, %v792_v52  ;;  %vm791_vm5 = vcmp.eq.f32.partialorder %v790_v54, 8.507059e+37 }
 0xa97   :  { %v1809_v45 = vpop.eup %1808 }
 0xa98   :  { %v782_v46 = vmul.f32 %v1809_v45, %v780_v44  ;;  %vm787_vm2 = vweird.f32 %v1809_v45 }
 0xa99   :  { %vm788_vm4 = vmor %vm786_vm3, %vm787_vm2 }
 0xa9a   :  { %v783_v47 = vsub.f32 1.0, %v782_v46 }
 0xa9c   :  { %v784_v53 = vmul.f32 %v1809_v45, %v783_v47 }
 0xa9e   :  { %v785_v55 = vadd.f32 %v1809_v45, %v784_v53 }
 0xaa0   :  { %v789_v57 = vsel %vm788_vm4, %v1809_v45, %v785_v55 }
 0xaa1   :  { %v794_v59 = vsel %vm791_vm5, %v793_v56, %v789_v57 }
 0xaa2   :  { %v796_v61 = vmul.f32 2.0, %v794_v59  ;;  %v798_v10 = vmul.f32 %v794_v59, %v744_v33 }
 0xaa4   :  { %v1692_v62 = vadd.f32 -1.0, %v796_v61 }
 0xaa6   :  { %800 = vrot.lane.b32.xlu0 %v1692_v62, %s1954_s12 }
 0xad0   :  { %57 = vadd.xlane.f32.xlu0 %v56_v0 }
 0xb18   :  { %v801_v1 = vpop.permute.xlu0 %800 }
 0xb19   :  { %v803_v3 = vmul.f32 %v801_v1, %v794_v59 }
 0xb1b   :  { %805 = vrot.lane.b32.xlu2 %v803_v3, %s1956_s22 }
 0xb43   :  { %v58_v4 = vpop.xlane.xlu0 %57 }
 0xb44   :  { %v77_v5 = vmul.f32 %v2008_v8, %v58_v4 }
 0xb46   :  { %v85_v6 = vsub.f32 %v33_v63, %v77_v5 }
 0xb48   :  { %v93_v7 = vmul.f32 %v85_v6, %v85_v6 }
 0xb4a   :  { %v111_v2 = vsel %vm40_vm0, %v93_v7, 0.0 }
 0xb4b   :  { %112 = vadd.xlane.f32.xlu2 %v111_v2 }
 0xb75   :  { %v806_v11 = vpop.permute.xlu2 %805 }
 0xb76   :  { %v2187_v12 = vadd.f32 %v806_v11, %v798_v10 }
 0xb78   :  { %1810 = vtanh.f32 %v2187_v12 }
 0xb7e   :  { %v1811_v13 = vpop.eup %1810 }
 0xb7f   :  { %811 = vrot.lane.b32.xlu1 %v1811_v13, %s1954_s12 }
 0xbbe   :  { %v113_v14 = vpop.xlane.xlu2 %112 }
 0xbbf   :  { %v125_v15 = vmul.f32 %v113_v14, %v2008_v8  ;;  %v34_v14 = vld [vmem:[%s2431_s0 + $0x30] sm:$0xff] }
 0xbc1   :  { %1812 = vrsqrt.f32 %v125_v15  ;;  %vm195_vm6 = vcmp.eq.f32.partialorder %v125_v15, inf  ;;  %v198_v22 = vand.u32 2147483648, %v125_v15  ;;  %vm197_vm7 = vcmp.eq.f32.partialorder %v125_v15, 0.0 }
 0xbc7   :  { %v1813_v16 = vpop.eup %1812 }
 0xbc8   :  { %v189_v17 = vmul.f32 %v1813_v16, %v125_v15 }
 0xbca   :  { %v190_v18 = vmul.f32 %v1813_v16, %v189_v17 }
 0xbcc   :  { %v191_v19 = vmul.f32 0.5, %v190_v18 }
 0xbce   :  { %v192_v20 = vsub.f32 1.5, %v191_v19 }
 0xbd0   :  { %v193_v21 = vmul.f32 %v1813_v16, %v192_v20 }
 0xbd2   :  { %v194_v23 = vmul.f32 %v193_v21, %v125_v15 }
 0xbd4   :  { %v196_v24 = vsel %vm195_vm6, %v125_v15, %v194_v23  ;;  %v59_v15 = vsel %vm40_vm0, %v34_v14, 0.0 }
 0xbd5   :  { %v199_v26 = vsel %vm197_vm7, %v198_v22, %v196_v24 }
 0xbd6   :  { %1814 = vrsqrt.f32 %v199_v26  ;;  %vm291_vm9 = vcmp.eq.f32.partialorder %v199_v26, inf  ;;  %v294_v33 = vand.u32 2147483648, %v199_v26  ;;  %vm293_vm10 = vcmp.eq.f32.partialorder %v199_v26, 0.0 }
 0xbdc   :  { %v1815_v27 = vpop.eup %1814 }
 0xbdd   :  { %v285_v28 = vmul.f32 %v1815_v27, %v199_v26 }
 0xbdf   :  { %v286_v29 = vmul.f32 %v1815_v27, %v285_v28 }
 0xbe1   :  { %v287_v30 = vmul.f32 0.5, %v286_v29 }
 0xbe3   :  { %v288_v31 = vsub.f32 1.5, %v287_v30 }
 0xbe5   :  { %v289_v32 = vmul.f32 %v1815_v27, %v288_v31 }
 0xbe7   :  { %v290_v34 = vmul.f32 %v289_v32, %v199_v26 }
 0xbe9   :  { %v292_v35 = vsel %vm291_vm9, %v199_v26, %v290_v34 }
 0xbea   :  { %v295_v36 = vsel %vm293_vm10, %v294_v33, %v292_v35 }
 0xbeb   :  { %v325_v37 = vadd.f32 1e-10, %v295_v36 }
 0xbed   :  { %1816 = vrcp.f32 %v325_v37  ;;  %v414_v43 = vand.u32 2147483648, %v325_v37  ;;  %vm408_vm11 = vweird.f32 %v325_v37  ;;  %v412_v45 = vand.u32 2147483647, %v325_v37 }
 0xbef   :  { %v415_v47 = vor.u32 1.1754944e-38, %v414_v43  ;;  %vm413_vm14 = vcmp.eq.f32.partialorder %v412_v45, 8.507059e+37 }
 0xbf1   :  { %v812_v38 = vpop.permute.xlu1 %811 }
 0xbf2   :  { %v814_v40 = vmul.f32 %v812_v38, %v794_v59  ;;  %v2202_v59 = vld [vmem:[%s2434_s3] ss:$0 sm:$0xff] }
 0xbf3   :  { %v1817_v41 = vpop.eup %1816 }
 0xbf4   :  { %816 = vrot.lane.b32.xlu0 %v814_v40, %s1956_s22  ;;  %v404_v42 = vmul.f32 %v1817_v41, %v325_v37  ;;  %vm409_vm12 = vweird.f32 %v1817_v41 }
 0xbf5   :  { %vm410_vm13 = vmor %vm408_vm11, %vm409_vm12 }
 0xbf6   :  { %v405_v44 = vsub.f32 1.0, %v404_v42 }
 0xbf8   :  { %v406_v46 = vmul.f32 %v1817_v41, %v405_v44 }
 0xbfa   :  { %v407_v52 = vadd.f32 %v1817_v41, %v406_v46 }
 0xbfc   :  { %v411_v53 = vsel %vm410_vm13, %v1817_v41, %v407_v52 }
 0xbfd   :  { %v416_v54 = vsel %vm413_vm14, %v415_v47, %v411_v53 }
 0xbfe   :  { %v417_v55 = vmul.f32 %v416_v54, %v85_v6 }
 0xc00   :  { %1676 = vmatmul.msk.f32.gmra.mxu0 %vm40_vm0, %v417_v55 }
 0xc66   :  { %v817_v56 = vpop.permute.xlu0 %816 }
 0xc67   :  { %1693 = vmatmul.msk.f32.vlgmr.msrb.gmra.mxu2 %vm557_vm8, %v817_v56 }
 0xc68   :  { %1222 = vmatpush.msrb.mxu2 %v2048_v48 }
 0xc6a   :  { %1223 = vmatpush.msrb.mxu2 %v2053_v49 }
 0xc6c   :  { %1224 = vmatpush.msrb.mxu2 %v2060_v50 }
 0xc6e   :  { %1225 = vmatpush.msrb.mxu2 %v2068_v51 }
 0xc7d   :  { %v513_v57 = vpop.f32.mrf.mxu0 }
 0xc7e   :  { %v2205_v61 = vadd.f32 %v2202_v59, %v513_v57 }
 0xcea   :  { %v837_v62 = vpop.f32.mrf.mxu2 }
 0xceb   :  { %v840_v63 = vadd.f32 %v837_v62, %v2205_v61 }
 0xced   :  { %v1694_v0 = vmul.f32 -1.442695, %v840_v63 }
 0xcef   :  { %1818 = vpow2.f32 %v1694_v0 }
 0xcf5   :  { %v1819_v48 = vpop.eup %1818 }
 0xcf6   :  { %v844_v49 = vadd.f32 1.0, %v1819_v48 }
 0xcf8   :  { %1820 = vrcp.f32 %v844_v49  ;;  %v856_v3 = vand.u32 2147483648, %v844_v49  ;;  %v854_v5 = vand.u32 2147483647, %v844_v49  ;;  %vm850_vm1 = vweird.f32 %v844_v49 }
 0xcfa   :  { %v857_v7 = vor.u32 1.1754944e-38, %v856_v3  ;;  %vm855_vm3 = vcmp.eq.f32.partialorder %v854_v5, 8.507059e+37 }
 0xcfe   :  { %v1821_v50 = vpop.eup %1820 }
 0xcff   :  { %v846_v1 = vmul.f32 %v1821_v50, %v844_v49  ;;  %vm851_vm15 = vweird.f32 %v1821_v50 }
 0xd00   :  { %vm852_vm2 = vmor %vm850_vm1, %vm851_vm15 }
 0xd01   :  { %v847_v51 = vsub.f32 1.0, %v846_v1 }
 0xd03   :  { %v848_v4 = vmul.f32 %v1821_v50, %v847_v51 }
 0xd05   :  { %v849_v6 = vadd.f32 %v1821_v50, %v848_v4 }
 0xd07   :  { %v853_v2 = vsel %vm852_vm2, %v1821_v50, %v849_v6  ;;  %v2228_v6 = vld [vmem:[%s2433_s2 + $0x18] sm:$0xff] }
 0xd08   :  { %v858_v10 = vsel %vm855_vm3, %v857_v7, %v853_v2  ;;  %v2234_v7 = vld [vmem:[%s2433_s2 + $0x10] sm:$0xff]  ;;  %v2240_v2 = vld [vmem:[%s2433_s2 + $0x8] sm:$0xff] }
 0xd09   :  { %v860_v11 = vmul.f32 2.0, %v858_v10  ;;  %v862_v23 = vmul.f32 %v858_v10, %v2187_v12 }
 0xd0b   :  { %v1695_v13 = vadd.f32 -1.0, %v860_v11  ;;  %v35_v11 = vld [vmem:[%s2431_s0 + $0x38] sm:$0xff] }
 0xd0d   :  { %864 = vrot.lane.b32.xlu1 %v1695_v13, %s1954_s12  ;;  %v62_v13 = vsel %vm40_vm0, %v35_v11, 0.0 }
 0xd37   :  { %60 = vadd.xlane.f32.xlu1 %v59_v15 }
 0xd7f   :  { %v865_v16 = vpop.permute.xlu1 %864 }
 0xd80   :  { %v867_v17 = vmul.f32 %v865_v16, %v858_v10 }
 0xd82   :  { %869 = vrot.lane.b32.xlu2 %v867_v17, %s1956_s22 }
 0xdaa   :  { %v61_v18 = vpop.xlane.xlu1 %60 }
 0xdab   :  { %v78_v19 = vmul.f32 %v2008_v8, %v61_v18 }
 0xdad   :  { %v86_v20 = vsub.f32 %v34_v14, %v78_v19 }
 0xdaf   :  { %v94_v21 = vmul.f32 %v86_v20, %v86_v20 }
 0xdb1   :  { %v114_v22 = vsel %vm40_vm0, %v94_v21, 0.0 }
 0xdb2   :  { %115 = vadd.xlane.f32.xlu0 %v114_v22 }
 0xddc   :  { %v870_v24 = vpop.permute.xlu2 %869 }
 0xddd   :  { %v2217_v26 = vadd.f32 %v870_v24, %v862_v23 }
 0xddf   :  { %1822 = vtanh.f32 %v2217_v26 }
 0xde5   :  { %v1823_v27 = vpop.eup %1822 }
 0xde6   :  { %875 = vrot.lane.b32.xlu2 %v1823_v27, %s1954_s12 }
 0xe25   :  { %v116_v28 = vpop.xlane.xlu0 %115 }
 0xe26   :  { %v126_v29 = vmul.f32 %v116_v28, %v2008_v8 }
 0xe28   :  { %1824 = vrsqrt.f32 %v126_v29  ;;  %vm207_vm4 = vcmp.eq.f32.partialorder %v126_v29, inf  ;;  %v210_v12 = vand.u32 2147483648, %v126_v29  ;;  %vm209_vm5 = vcmp.eq.f32.partialorder %v126_v29, 0.0 }
 0xe2e   :  { %v1825_v30 = vpop.eup %1824 }
 0xe2f   :  { %v201_v31 = vmul.f32 %v1825_v30, %v126_v29 }
 0xe31   :  { %v202_v32 = vmul.f32 %v1825_v30, %v201_v31 }
 0xe33   :  { %v203_v33 = vmul.f32 0.5, %v202_v32 }
 0xe35   :  { %v204_v34 = vsub.f32 1.5, %v203_v33 }
 0xe37   :  { %v205_v35 = vmul.f32 %v1825_v30, %v204_v34 }
 0xe39   :  { %v206_v36 = vmul.f32 %v205_v35, %v126_v29 }
 0xe3b   :  { %v208_v37 = vsel %vm207_vm4, %v126_v29, %v206_v36 }
 0xe3c   :  { %v211_v38 = vsel %vm209_vm5, %v210_v12, %v208_v37 }
 0xe3d   :  { %1826 = vrsqrt.f32 %v211_v38  ;;  %vm303_vm6 = vcmp.eq.f32.partialorder %v211_v38, inf  ;;  %v306_v52 = vand.u32 2147483648, %v211_v38  ;;  %vm305_vm7 = vcmp.eq.f32.partialorder %v211_v38, 0.0 }
 0xe40   :  { %v876_v40 = vpop.permute.xlu2 %875 }
 0xe41   :  { %v878_v41 = vmul.f32 %v876_v40, %v858_v10  ;;  %v2246_v10 = vld [vmem:[%s2433_s2] sm:$0xff] }
 0xe43   :  { %v1827_v42 = vpop.eup %1826  ;;  %880 = vrot.lane.b32.xlu2 %v878_v41, %s1956_s22 }
 0xe44   :  { %v297_v43 = vmul.f32 %v1827_v42, %v211_v38 }
 0xe46   :  { %v298_v44 = vmul.f32 %v1827_v42, %v297_v43 }
 0xe48   :  { %v299_v45 = vmul.f32 0.5, %v298_v44 }
 0xe4a   :  { %v300_v46 = vsub.f32 1.5, %v299_v45 }
 0xe4c   :  { %v301_v47 = vmul.f32 %v1827_v42, %v300_v46 }
 0xe4e   :  { %v302_v53 = vmul.f32 %v301_v47, %v211_v38 }
 0xe50   :  { %v304_v54 = vsel %vm303_vm6, %v211_v38, %v302_v53 }
 0xe51   :  { %v307_v55 = vsel %vm305_vm7, %v306_v52, %v304_v54 }
 0xe52   :  { %v326_v56 = vadd.f32 1e-10, %v307_v55 }
 0xe54   :  { %1828 = vrcp.f32 %v326_v56  ;;  %v429_v63 = vand.u32 2147483648, %v326_v56  ;;  %vm423_vm9 = vweird.f32 %v326_v56  ;;  %v427_v48 = vand.u32 2147483647, %v326_v56 }
 0xe56   :  { %v430_v50 = vor.u32 1.1754944e-38, %v429_v63  ;;  %vm428_vm12 = vcmp.eq.f32.partialorder %v427_v48, 8.507059e+37 }
 0xe5a   :  { %v1829_v57 = vpop.eup %1828 }
 0xe5b   :  { %v419_v62 = vmul.f32 %v1829_v57, %v326_v56  ;;  %vm424_vm10 = vweird.f32 %v1829_v57 }
 0xe5c   :  { %vm425_vm11 = vmor %vm423_vm9, %vm424_vm10 }
 0xe5d   :  { %v420_v0 = vsub.f32 1.0, %v419_v62 }
 0xe5f   :  { %v421_v49 = vmul.f32 %v1829_v57, %v420_v0 }
 0xe61   :  { %v422_v1 = vadd.f32 %v1829_v57, %v421_v49 }
 0xe63   :  { %v426_v51 = vsel %vm425_vm11, %v1829_v57, %v422_v1 }
 0xe64   :  { %v431_v3 = vsel %vm428_vm12, %v430_v50, %v426_v51 }
 0xe65   :  { %v432_v4 = vmul.f32 %v431_v3, %v86_v20 }
 0xe67   :  { %1677 = vmatmul.msk.f32.gmra.mxu0 %vm40_vm0, %v432_v4 }
 0xe6c   :  { %63 = vadd.xlane.f32.xlu2 %v62_v13 }
 0xe9d   :  { %v881_v5 = vpop.permute.xlu2 %880 }
 0xe9e   :  { %1696 = vmatmul.msk.f32.vlgmr.msrb.gmra.mxu3 %vm557_vm8, %v881_v5 }
 0xe9f   :  { %1288 = vmatpush.msrb.mxu3 %v2228_v6 }
 0xea1   :  { %1289 = vmatpush.msrb.mxu3 %v2234_v7 }
 0xea3   :  { %1290 = vmatpush.msrb.mxu3 %v2240_v2 }
 0xea5   :  { %1291 = vmatpush.msrb.mxu3 %v2246_v10 }
 0xedf   :  { %v64_v35 = vpop.xlane.xlu2 %63 }
 0xee0   :  { %v79_v12 = vmul.f32 %v2008_v8, %v64_v35 }
 0xee2   :  { %v87_v36 = vsub.f32 %v35_v11, %v79_v12 }
 0xee4   :  { %v516_v14 = vpop.f32.mrf.mxu0  ;;  %v95_v37 = vmul.f32 %v87_v36, %v87_v36 }
 0xee5   :  { %v2254_v15 = vadd.f32 %v2202_v59, %v516_v14 }
 0xee6   :  { %v117_v38 = vsel %vm40_vm0, %v95_v37, 0.0 }
 0xf21   :  { %v901_v16 = vpop.f32.mrf.mxu3 }
 0xf22   :  { %v904_v17 = vadd.f32 %v901_v16, %v2254_v15 }
 0xf24   :  { %v1697_v18 = vmul.f32 -1.442695, %v904_v17 }
 0xf26   :  { %1830 = vpow2.f32 %v1697_v18 }
 0xf2c   :  { %v1831_v19 = vpop.eup %1830 }
 0xf2d   :  { %v908_v20 = vadd.f32 1.0, %v1831_v19 }
 0xf2f   :  { %1832 = vrcp.f32 %v908_v20  ;;  %v920_v24 = vand.u32 2147483648, %v908_v20  ;;  %v918_v28 = vand.u32 2147483647, %v908_v20  ;;  %vm914_vm14 = vweird.f32 %v908_v20 }
 0xf31   :  { %v921_v30 = vor.u32 1.1754944e-38, %v920_v24  ;;  %vm919_vm1 = vcmp.eq.f32.partialorder %v918_v28, 8.507059e+37 }
 0xf35   :  { %v1833_v21 = vpop.eup %1832 }
 0xf36   :  { %v910_v22 = vmul.f32 %v1833_v21, %v908_v20  ;;  %vm915_vm13 = vweird.f32 %v1833_v21 }
 0xf37   :  { %vm916_vm15 = vmor %vm914_vm14, %vm915_vm13 }
 0xf38   :  { %v911_v23 = vsub.f32 1.0, %v910_v22 }
 0xf3a   :  { %v912_v27 = vmul.f32 %v1833_v21, %v911_v23 }
 0xf3c   :  { %v913_v29 = vadd.f32 %v1833_v21, %v912_v27 }
 0xf3e   :  { %v917_v31 = vsel %vm916_vm15, %v1833_v21, %v913_v29 }
 0xf3f   :  { %v2257_v32 = vsel %vm919_vm1, %v921_v30, %v917_v31 }
 0xf40   :  { %v924_v33 = vmul.f32 2.0, %v2257_v32 }
 0xf42   :  { %v1698_v34 = vadd.f32 -1.0, %v924_v33 }
 0xf44   :  { %928 = vrot.lane.b32.xlu1 %v1698_v34, %s1954_s12 }
 0xf6e   :  { %118 = vadd.xlane.f32.xlu1 %v117_v38 }
 0xfb6   :  { %v929_v40 = vpop.permute.xlu1 %928 }
 0xfb7   :  { %v931_v41 = vmul.f32 %v929_v40, %v2257_v32 }
 0xfb9   :  { %933 = vrot.lane.b32.xlu0 %v931_v41, %s1956_s22 }
 0xfe1   :  { %v119_v42 = vpop.xlane.xlu1 %118 }
 0xfe2   :  { %v127_v43 = vmul.f32 %v119_v42, %v2008_v8  ;;  %v926_v8 = vmul.f32 %v2257_v32, %v2217_v26 }
 0xfe4   :  { %1834 = vrsqrt.f32 %v127_v43  ;;  %vm219_vm2 = vcmp.eq.f32.partialorder %v127_v43, inf  ;;  %v222_v54 = vand.u32 2147483648, %v127_v43  ;;  %vm221_vm3 = vcmp.eq.f32.partialorder %v127_v43, 0.0 }
 0xfea   :  { %v1835_v44 = vpop.eup %1834 }
 0xfeb   :  { %v213_v45 = vmul.f32 %v1835_v44, %v127_v43 }
 0xfed   :  { %v214_v46 = vmul.f32 %v1835_v44, %v213_v45 }
 0xfef   :  { %v215_v47 = vmul.f32 0.5, %v214_v46 }
 0xff1   :  { %v216_v52 = vsub.f32 1.5, %v215_v47 }
 0xff3   :  { %v217_v53 = vmul.f32 %v1835_v44, %v216_v52 }
 0xff5   :  { %v218_v55 = vmul.f32 %v217_v53, %v127_v43 }
 0xff7   :  { %v220_v56 = vsel %vm219_vm2, %v127_v43, %v218_v55 }
 0xff8   :  { %v223_v57 = vsel %vm221_vm3, %v222_v54, %v220_v56 }
 0xff9   :  { %1836 = vrsqrt.f32 %v223_v57  ;;  %vm315_vm4 = vcmp.eq.f32.partialorder %v223_v57, inf  ;;  %v318_v51 = vand.u32 2147483648, %v223_v57  ;;  %vm317_vm5 = vcmp.eq.f32.partialorder %v223_v57, 0.0 }
 0xfff   :  { %v1837_v62 = vpop.eup %1836 }
0x1000   :  { %v309_v63 = vmul.f32 %v1837_v62, %v223_v57 }
0x1002   :  { %v310_v0 = vmul.f32 %v1837_v62, %v309_v63 }
0x1004   :  { %v311_v48 = vmul.f32 0.5, %v310_v0 }
0x1006   :  { %v312_v49 = vsub.f32 1.5, %v311_v48 }
0x1008   :  { %v313_v50 = vmul.f32 %v1837_v62, %v312_v49 }
0x100a   :  { %v314_v4 = vmul.f32 %v313_v50, %v223_v57 }
0x100c   :  { %v316_v5 = vsel %vm315_vm4, %v223_v57, %v314_v4 }
0x100d   :  { %v319_v11 = vsel %vm317_vm5, %v318_v51, %v316_v5 }
0x100e   :  { %v327_v13 = vadd.f32 1e-10, %v319_v11 }
0x1010   :  { %v444_v26 = vand.u32 2147483648, %v327_v13  ;;  %vm438_vm6 = vweird.f32 %v327_v13  ;;  %v442_v19 = vand.u32 2147483647, %v327_v13 }
0x1012   :  { %v445_v21 = vor.u32 1.1754944e-38, %v444_v26  ;;  %vm443_vm10 = vcmp.eq.f32.partialorder %v442_v19, 8.507059e+37 }
0x102b   :  { %v934_v1 = vpop.permute.xlu0 %933 }
0x102c   :  { %v2268_v3 = vadd.f32 %v934_v1, %v926_v8 }
0x102e   :  { %1838 = vtanh.f32 %v2268_v3 }
0x102f   :  { %1840 = vrcp.f32 %v327_v13 }
0x1034   :  { %v1839_v14 = vpop.eup %1838 }
0x1035   :  { %939 = vrot.lane.b32.xlu0 %v1839_v14, %s1954_s12  ;;  %v1841_v16 = vpop.eup %1840 }
0x1036   :  { %v434_v17 = vmul.f32 %v1841_v16, %v327_v13  ;;  %vm439_vm7 = vweird.f32 %v1841_v16 }
0x1037   :  { %vm440_vm9 = vmor %vm438_vm6, %vm439_vm7 }
0x1038   :  { %v435_v18 = vsub.f32 1.0, %v434_v17 }
0x103a   :  { %v436_v20 = vmul.f32 %v1841_v16, %v435_v18 }
0x103c   :  { %v437_v22 = vadd.f32 %v1841_v16, %v436_v20 }
0x103e   :  { %v441_v23 = vsel %vm440_vm9, %v1841_v16, %v437_v22 }
0x103f   :  { %v446_v24 = vsel %vm443_vm10, %v445_v21, %v441_v23 }
0x1040   :  { %v447_v27 = vmul.f32 %v446_v24, %v87_v36 }
0x1042   :  { %1678 = vmatmul.msk.f32.gmra.mxu0 %vm40_vm0, %v447_v27 }
0x10a7   :  { %v940_v28 = vpop.permute.xlu0 %939 }
0x10a8   :  { %v942_v29 = vmul.f32 %v940_v28, %v2257_v32 }
0x10aa   :  { %944 = vrot.lane.b32.xlu0 %v942_v29, %s1956_s22 }
0x10bf   :  { %v519_v31 = vpop.f32.mrf.mxu0 }
0x10c0   :  { %v2281_v33 = vadd.f32 %v2202_v59, %v519_v31 }
0x111c   :  { %v945_v30 = vpop.permute.xlu0 %944 }
0x111d   :  { %1699 = vmatmul.msk.f32.vlgmr.msra.gmra.mxu1 %vm557_vm8, %v945_v30 }
0x111e   :  { %1354 = vmatpush.msra.mxu1 %v2228_v6 }
0x1120   :  { %1355 = vmatpush.msra.mxu1 %v2234_v7 }
0x1122   :  { %1356 = vmatpush.msra.mxu1 %v2240_v2 }
0x1124   :  { %1357 = vmatpush.msra.mxu1 %v2246_v10 }
0x119a   :  { %v965_v34 = vpop.f32.mrf.mxu1 }
0x119b   :  { %v968_v32 = vadd.f32 %v965_v34, %v2281_v33 }
0x119d   :  { %v1700_v35 = vmul.f32 -1.442695, %v968_v32 }
0x119f   :  { %1842 = vpow2.f32 %v1700_v35 }
0x11a5   :  { %v1843_v12 = vpop.eup %1842 }
0x11a6   :  { %v972_v36 = vadd.f32 1.0, %v1843_v12 }
0x11a8   :  { %1844 = vrcp.f32 %v972_v36  ;;  %v984_v41 = vand.u32 2147483648, %v972_v36  ;;  %v982_v43 = vand.u32 2147483647, %v972_v36  ;;  %vm978_vm11 = vweird.f32 %v972_v36 }
0x11aa   :  { %v985_v59 = vor.u32 1.1754944e-38, %v984_v41  ;;  %vm983_vm13 = vcmp.eq.f32.partialorder %v982_v43, 8.507059e+37 }
0x11ae   :  { %v1845_v37 = vpop.eup %1844 }
0x11af   :  { %v974_v38 = vmul.f32 %v1845_v37, %v972_v36  ;;  %vm979_vm0 = vweird.f32 %v1845_v37 }
0x11b0   :  { %vm980_vm12 = vmor %vm978_vm11, %vm979_vm0 }
0x11b1   :  { %v975_v40 = vsub.f32 1.0, %v974_v38 }
0x11b3   :  { %v976_v42 = vmul.f32 %v1845_v37, %v975_v40 }
0x11b5   :  { %v977_v44 = vadd.f32 %v1845_v37, %v976_v42 }
0x11b7   :  { %v981_v45 = vsel %vm980_vm12, %v1845_v37, %v977_v44 }
0x11b8   :  { %v986_v46 = vsel %vm983_vm13, %v985_v59, %v981_v45 }
0x11b9   :  { %v988_v47 = vmul.f32 2.0, %v986_v46  ;;  %v990_v55 = vmul.f32 %v986_v46, %v2268_v3 }
0x11bb   :  { %v1701_v52 = vadd.f32 -1.0, %v988_v47 }
0x11bd   :  { %992 = vrot.lane.b32.xlu2 %v1701_v52, %s1954_s12 }
0x1217   :  { %v993_v53 = vpop.permute.xlu2 %992 }
0x1218   :  { %v995_v54 = vmul.f32 %v993_v53, %v986_v46 }
0x121a   :  { %997 = vrot.lane.b32.xlu0 %v995_v54, %s1956_s22 }
0x128c   :  { %v998_v56 = vpop.permute.xlu0 %997 }
0x128d   :  { %v1000_v57 = vadd.f32 %v998_v56, %v990_v55 }
0x128f   :  { %1846 = vtanh.f32 %v1000_v57 }
0x1295   :  { %v1847_v62 = vpop.eup %1846 }
0x1296   :  { %1003 = vrot.lane.b32.xlu0 %v1847_v62, %s1954_s12 }
0x1308   :  { %v1004_v63 = vpop.permute.xlu0 %1003 }
0x1309   :  { %v1006_v0 = vmul.f32 %v1004_v63, %v986_v46 }
0x130b   :  { %1008 = vrot.lane.b32.xlu0 %v1006_v0, %s1956_s22 }
0x137d   :  { %v1009_v48 = vpop.permute.xlu0 %1008 }
0x137e   :  { %1702 = vmatmul.msk.f32.vlgmr.msra.gmra.mxu2 %vm557_vm8, %v1009_v48 }
0x137f   :  { %1420 = vmatpush.msra.mxu2 %v2228_v6 }
0x1381   :  { %1421 = vmatpush.msra.mxu2 %v2234_v7 }
0x1383   :  { %1422 = vmatpush.msra.mxu2 %v2240_v2 }
0x1385   :  { %1423 = vmatpush.msra.mxu2 %v2246_v10 }
0x1401   :  { %v1029_v49 = vpop.f32.mrf.mxu2 }
0x1402   :  { %v1032_v8 = vadd.f32 %v1029_v49, %v2033_v58 }
0x1404   :  { %v1703_v50 = vmul.f32 -1.442695, %v1032_v8 }
0x1406   :  { %1848 = vpow2.f32 %v1703_v50 }
0x140c   :  { %v1849_v1 = vpop.eup %1848 }
0x140d   :  { %v1036_v51 = vadd.f32 1.0, %v1849_v1 }
0x140f   :  { %1850 = vrcp.f32 %v1036_v51  ;;  %v1048_v11 = vand.u32 2147483648, %v1036_v51  ;;  %v1046_v14 = vand.u32 2147483647, %v1036_v51  ;;  %vm1042_vm15 = vweird.f32 %v1036_v51 }
0x1411   :  { %v1049_v17 = vor.u32 1.1754944e-38, %v1048_v11  ;;  %vm1047_vm2 = vcmp.eq.f32.partialorder %v1046_v14, 8.507059e+37 }
0x1415   :  { %v1851_v3 = vpop.eup %1850 }
0x1416   :  { %v1038_v4 = vmul.f32 %v1851_v3, %v1036_v51  ;;  %vm1043_vm14 = vweird.f32 %v1851_v3 }
0x1417   :  { %vm1044_vm1 = vmor %vm1042_vm15, %vm1043_vm14 }
0x1418   :  { %v1039_v5 = vsub.f32 1.0, %v1038_v4 }
0x141a   :  { %v1040_v13 = vmul.f32 %v1851_v3, %v1039_v5 }
0x141c   :  { %v1041_v16 = vadd.f32 %v1851_v3, %v1040_v13 }
0x141e   :  { %v1045_v26 = vsel %vm1044_vm1, %v1851_v3, %v1041_v16 }
0x141f   :  { %v1050_v18 = vsel %vm1047_vm2, %v1049_v17, %v1045_v26 }
0x1420   :  { %v1052_v58 = vmul.f32 2.0, %v1050_v18  ;;  %v1054_v22 = vmul.f32 %v1050_v18, %v1000_v57 }
0x1422   :  { %v1704_v19 = vadd.f32 -1.0, %v1052_v58 }
0x1424   :  { %1056 = vrot.lane.b32.xlu2 %v1704_v19, %s1954_s12 }
0x147e   :  { %v1057_v20 = vpop.permute.xlu2 %1056 }
0x147f   :  { %v1059_v21 = vmul.f32 %v1057_v20, %v1050_v18 }
0x1481   :  { %1061 = vrot.lane.b32.xlu1 %v1059_v21, %s1956_s22 }
0x14f3   :  { %v1062_v23 = vpop.permute.xlu1 %1061 }
0x14f4   :  { %v1064_v24 = vadd.f32 %v1062_v23, %v1054_v22 }
0x14f6   :  { %1852 = vtanh.f32 %v1064_v24 }
0x14fc   :  { %v1853_v27 = vpop.eup %1852 }
0x14fd   :  { %1067 = vrot.lane.b32.xlu0 %v1853_v27, %s1954_s12 }
0x156f   :  { %v1068_v28 = vpop.permute.xlu0 %1067 }
0x1570   :  { %v1070_v29 = vmul.f32 %v1068_v28, %v1050_v18 }
0x1572   :  { %1072 = vrot.lane.b32.xlu2 %v1070_v29, %s1956_s22 }
0x15cc   :  { %v1073_v30 = vpop.permute.xlu2 %1072 }
0x15cd   :  { %1075 = vst.msk [vmem:[#allocation2] sm:$0xff] %vm557_vm8, %v1073_v30  ;;  %1705 = vmatmul.msk.f32.vlgmr.msra.gmra.mxu3 %vm557_vm8, %v1073_v30 }
0x15ce   :  { %1486 = vmatpush.msra.mxu3 %v2228_v6 }
0x15d0   :  { %1487 = vmatpush.msra.mxu3 %v2234_v7 }
0x15d2   :  { %1488 = vmatpush.msra.mxu3 %v2240_v2 }
0x15d4   :  { %1489 = vmatpush.msra.mxu3 %v2246_v10 }
0x1650   :  { %v1095_v31 = vpop.f32.mrf.mxu3 }
0x1651   :  { %v1098_v34 = vadd.f32 %v1095_v31, %v2102_v60 }
0x1653   :  { %v1706_v32 = vmul.f32 -1.442695, %v1098_v34 }
0x1655   :  { %1854 = vpow2.f32 %v1706_v32 }
0x165b   :  { %v1855_v35 = vpop.eup %1854 }
0x165c   :  { %v1102_v12 = vadd.f32 1.0, %v1855_v35 }
0x165e   :  { %1856 = vrcp.f32 %v1102_v12  ;;  %v1114_v40 = vand.u32 2147483648, %v1102_v12  ;;  %v1112_v6 = vand.u32 2147483647, %v1102_v12  ;;  %vm1108_vm4 = vweird.f32 %v1102_v12 }
0x1660   :  { %v1115_v2 = vor.u32 1.1754944e-38, %v1114_v40  ;;  %vm1113_vm6 = vcmp.eq.f32.partialorder %v1112_v6, 8.507059e+37 }
0x1664   :  { %v1857_v36 = vpop.eup %1856 }
0x1665   :  { %v1104_v37 = vmul.f32 %v1857_v36, %v1102_v12  ;;  %vm1109_vm3 = vweird.f32 %v1857_v36 }
0x1666   :  { %vm1110_vm5 = vmor %vm1108_vm4, %vm1109_vm3  ;;  %vm1619_vm4 = vcmask 15360  }
0x1667   :  { %v1105_v38 = vsub.f32 1.0, %v1104_v37 }
0x1669   :  { %v1106_v41 = vmul.f32 %v1857_v36, %v1105_v38 }
0x166b   :  { %v1107_v7 = vadd.f32 %v1857_v36, %v1106_v41 }
0x166d   :  { %v1111_v10 = vsel %vm1110_vm5, %v1857_v36, %v1107_v7 }
0x166e   :  { %v1116_v42 = vsel %vm1113_vm6, %v1115_v2, %v1111_v10 }
0x166f   :  { %v1118_v60 = vmul.f32 2.0, %v1116_v42  ;;  %v1120_v45 = vmul.f32 %v1116_v42, %v1064_v24 }
0x1671   :  { %v1707_v43 = vadd.f32 -1.0, %v1118_v60 }
0x1673   :  { %1122 = vrot.lane.b32.xlu0 %v1707_v43, %s1954_s12 }
0x16e5   :  { %v1123_v44 = vpop.permute.xlu0 %1122 }
0x16e6   :  { %v1125_v59 = vmul.f32 %v1123_v44, %v1116_v42 }
0x16e8   :  { %1127 = vrot.lane.b32.xlu2 %v1125_v59, %s1956_s22 }
0x1742   :  { %v1128_v46 = vpop.permute.xlu2 %1127 }
0x1743   :  { %v1130_v47 = vadd.f32 %v1128_v46, %v1120_v45 }
0x1745   :  { %1858 = vtanh.f32 %v1130_v47 }
0x174b   :  { %v1859_v52 = vpop.eup %1858 }
0x174c   :  { %1133 = vrot.lane.b32.xlu0 %v1859_v52, %s1954_s12 }
0x17be   :  { %v1134_v53 = vpop.permute.xlu0 %1133 }
0x17bf   :  { %v1136_v54 = vmul.f32 %v1134_v53, %v1116_v42 }
0x17c1   :  { %1138 = vrot.lane.b32.xlu2 %v1136_v54, %s1956_s22 }
0x181b   :  { %v1139_v55 = vpop.permute.xlu2 %1138 }
0x181c   :  { %1141 = vst.msk [vmem:[#allocation2 + $0x8] sm:$0xff] %vm557_vm8, %v1139_v55  ;;  %1708 = vmatmul.msk.f32.vlgmr.msrb.gmra.mxu1 %vm557_vm8, %v1139_v55 }
0x1899   :  { %v1161_v56 = vpop.f32.mrf.mxu1 }
0x189a   :  { %v1164_v57 = vadd.f32 %v1161_v56, %v2124_v9 }
0x189c   :  { %v1709_v62 = vmul.f32 -1.442695, %v1164_v57 }
0x189e   :  { %1860 = vpow2.f32 %v1709_v62 }
0x18a4   :  { %v1861_v63 = vpop.eup %1860 }
0x18a5   :  { %v1168_v0 = vadd.f32 1.0, %v1861_v63 }
0x18a7   :  { %1862 = vrcp.f32 %v1168_v0  ;;  %v1180_v50 = vand.u32 2147483648, %v1168_v0  ;;  %v1178_v51 = vand.u32 2147483647, %v1168_v0  ;;  %vm1174_vm9 = vweird.f32 %v1168_v0 }
0x18a9   :  { %v1181_v4 = vor.u32 1.1754944e-38, %v1180_v50  ;;  %vm1179_vm0 = vcmp.eq.f32.partialorder %v1178_v51, 8.507059e+37 }
0x18ad   :  { %v1863_v48 = vpop.eup %1862 }
0x18ae   :  { %v1170_v49 = vmul.f32 %v1863_v48, %v1168_v0  ;;  %vm1175_vm7 = vweird.f32 %v1863_v48 }
0x18af   :  { %vm1176_vm10 = vmor %vm1174_vm9, %vm1175_vm7 }
0x18b0   :  { %v1171_v8 = vsub.f32 1.0, %v1170_v49 }
0x18b2   :  { %v1172_v1 = vmul.f32 %v1863_v48, %v1171_v8 }
0x18b4   :  { %v1173_v3 = vadd.f32 %v1863_v48, %v1172_v1 }
0x18b6   :  { %v1177_v5 = vsel %vm1176_vm10, %v1863_v48, %v1173_v3 }
0x18b7   :  { %v1182_v11 = vsel %vm1179_vm0, %v1181_v4, %v1177_v5 }
0x18b8   :  { %v1184_v9 = vmul.f32 2.0, %v1182_v11  ;;  %v1186_v17 = vmul.f32 %v1182_v11, %v1130_v47 }
0x18ba   :  { %v1710_v13 = vadd.f32 -1.0, %v1184_v9 }
0x18bc   :  { %1188 = vrot.lane.b32.xlu1 %v1710_v13, %s1954_s12  ;;  %v1549_v13 = vld [vmem:[%s2435_s4 + $0x18] sm:$0xff] }
0x18bd   :  { %1590 = vmatpush.msrb.mxu1 %v1549_v13 }
0x192e   :  { %v1189_v14 = vpop.permute.xlu1 %1188 }
0x192f   :  { %v1191_v16 = vmul.f32 %v1189_v14, %v1182_v11  ;;  %v1548_v14 = vld [vmem:[%s2435_s4 + $0x10] sm:$0xff] }
0x1930   :  { %1591 = vmatpush.msrb.mxu1 %v1548_v14 }
0x1931   :  { %1193 = vrot.lane.b32.xlu0 %v1191_v16, %s1956_s22  ;;  %v1547_v16 = vld [vmem:[%s2435_s4 + $0x8] sm:$0xff] }
0x1932   :  { %1592 = vmatpush.msrb.mxu1 %v1547_v16 }
0x19a3   :  { %v1194_v26 = vpop.permute.xlu0 %1193 }
0x19a4   :  { %v1196_v18 = vadd.f32 %v1194_v26, %v1186_v17  ;;  %v1546_v17 = vld [vmem:[%s2435_s4] sm:$0xff] }
0x19a5   :  { %1593 = vmatpush.msrb.mxu1 %v1546_v17 }
0x19a6   :  { %1864 = vtanh.f32 %v1196_v18 }
0x19ac   :  { %v1865_v58 = vpop.eup %1864 }
0x19ad   :  { %1199 = vrot.lane.b32.xlu2 %v1865_v58, %s1954_s12  ;;  %v1539_v58 = vld [vmem:[#allocation2 + $0x8] sm:$0xff] }
0x1a07   :  { %v1200_v19 = vpop.permute.xlu2 %1199 }
0x1a08   :  { %v1202_v20 = vmul.f32 %v1200_v19, %v1182_v11 }
0x1a0a   :  { %1204 = vrot.lane.b32.xlu1 %v1202_v20, %s1956_s22 }
0x1a7c   :  { %v1205_v21 = vpop.permute.xlu1 %1204 }
0x1a7d   :  { %1207 = vst.msk [vmem:[#allocation2 + $0x10] sm:$0xff] %vm557_vm8, %v1205_v21  ;;  %1711 = vmatmul.msk.f32.vlgmr.msrb.gmra.mxu2 %vm557_vm8, %v1205_v21 }
0x1a7e   :  { %1734 = vmatpush.msrb.mxu2 %v1549_v13 }
0x1a80   :  { %1736 = vmatpush.msrb.mxu2 %v1548_v14 }
0x1a82   :  { %1738 = vmatpush.msrb.mxu2 %v1547_v16 }
0x1a84   :  { %1740 = vmatpush.msrb.mxu2 %v1546_v17  ;;  %v1540_v19 = vld [vmem:[#allocation2 + $0x10] sm:$0xff] }
0x1b00   :  { %v1227_v22 = vpop.f32.mrf.mxu2 }
0x1b01   :  { %v1230_v23 = vadd.f32 %v1227_v22, %v2152_v25 }
0x1b03   :  { %v1712_v24 = vmul.f32 -1.442695, %v1230_v23  ;;  %v2355_v23 = vld [vmem:[%s2436_s5] ss:$0 sm:$0xff] }
0x1b05   :  { %1866 = vpow2.f32 %v1712_v24 }
0x1b0b   :  { %v1867_v27 = vpop.eup %1866 }
0x1b0c   :  { %v1234_v28 = vadd.f32 1.0, %v1867_v27 }
0x1b0e   :  { %1868 = vrcp.f32 %v1234_v28  ;;  %v1246_v34 = vand.u32 2147483648, %v1234_v28  ;;  %v1244_v35 = vand.u32 2147483647, %v1234_v28  ;;  %vm1240_vm12 = vweird.f32 %v1234_v28 }
0x1b10   :  { %v1247_v36 = vor.u32 1.1754944e-38, %v1246_v34  ;;  %vm1245_vm14 = vcmp.eq.f32.partialorder %v1244_v35, 8.507059e+37 }
0x1b14   :  { %v1869_v29 = vpop.eup %1868 }
0x1b15   :  { %v1236_v30 = vmul.f32 %v1869_v29, %v1234_v28  ;;  %vm1241_vm11 = vweird.f32 %v1869_v29 }
0x1b16   :  { %vm1242_vm13 = vmor %vm1240_vm12, %vm1241_vm11 }
0x1b17   :  { %v1237_v31 = vsub.f32 1.0, %v1236_v30 }
0x1b19   :  { %v1238_v32 = vmul.f32 %v1869_v29, %v1237_v31 }
0x1b1b   :  { %v1239_v12 = vadd.f32 %v1869_v29, %v1238_v32 }
0x1b1d   :  { %v1243_v37 = vsel %vm1242_vm13, %v1869_v29, %v1239_v12 }
0x1b1e   :  { %v1248_v38 = vsel %vm1245_vm14, %v1247_v36, %v1243_v37 }
0x1b1f   :  { %v1250_v25 = vmul.f32 2.0, %v1248_v38  ;;  %v1252_v7 = vmul.f32 %v1248_v38, %v1196_v18  ;;  %v1538_v18 = vld [vmem:[#allocation2] sm:$0xff] }
0x1b21   :  { %v1713_v40 = vadd.f32 -1.0, %v1250_v25 }
0x1b23   :  { %1254 = vrot.lane.b32.xlu0 %v1713_v40, %s1954_s12 }
0x1b95   :  { %v1255_v41 = vpop.permute.xlu0 %1254 }
0x1b96   :  { %v1257_v6 = vmul.f32 %v1255_v41, %v1248_v38 }
0x1b98   :  { %1259 = vrot.lane.b32.xlu2 %v1257_v6, %s1956_s22 }
0x1bf2   :  { %v1260_v2 = vpop.permute.xlu2 %1259 }
0x1bf3   :  { %v1262_v10 = vadd.f32 %v1260_v2, %v1252_v7 }
0x1bf5   :  { %1870 = vtanh.f32 %v1262_v10 }
0x1bfb   :  { %v1871_v42 = vpop.eup %1870 }
0x1bfc   :  { %1265 = vrot.lane.b32.xlu1 %v1871_v42, %s1954_s12 }
0x1c6e   :  { %v1266_v60 = vpop.permute.xlu1 %1265 }
0x1c6f   :  { %v1268_v43 = vmul.f32 %v1266_v60, %v1248_v38 }
0x1c71   :  { %1270 = vrot.lane.b32.xlu0 %v1268_v43, %s1956_s22 }
0x1ce3   :  { %v1271_v44 = vpop.permute.xlu0 %1270 }
0x1ce4   :  { %1273 = vst.msk [vmem:[#allocation2 + $0x18] sm:$0xff] %vm557_vm8, %v1271_v44  ;;  %1714 = vmatmul.msk.f32.vlgmr.msrb.gmra.mxu3 %vm557_vm8, %v1271_v44 }
0x1ce5   :  { %1735 = vmatpush.msrb.mxu3 %v1549_v13 }
0x1ce7   :  { %1737 = vmatpush.msrb.mxu3 %v1548_v14 }
0x1ce9   :  { %1739 = vmatpush.msrb.mxu3 %v1547_v16 }
0x1ceb   :  { %1741 = vmatpush.msrb.mxu3 %v1546_v17 }
0x1d67   :  { %v1293_v59 = vpop.f32.mrf.mxu3 }
0x1d68   :  { %v1296_v45 = vadd.f32 %v1293_v59, %v2176_v39 }
0x1d6a   :  { %v1715_v46 = vmul.f32 -1.442695, %v1296_v45 }
0x1d6c   :  { %1872 = vpow2.f32 %v1715_v46 }
0x1d72   :  { %v1873_v47 = vpop.eup %1872 }
0x1d73   :  { %v1300_v52 = vadd.f32 1.0, %v1873_v47 }
0x1d75   :  { %1874 = vrcp.f32 %v1300_v52  ;;  %v1312_v56 = vand.u32 2147483648, %v1300_v52  ;;  %v1310_v62 = vand.u32 2147483647, %v1300_v52  ;;  %vm1306_vm1 = vweird.f32 %v1300_v52 }
0x1d77   :  { %v1313_v0 = vor.u32 1.1754944e-38, %v1312_v56  ;;  %vm1311_vm3 = vcmp.eq.f32.partialorder %v1310_v62, 8.507059e+37 }
0x1d7b   :  { %v1875_v53 = vpop.eup %1874 }
0x1d7c   :  { %v1302_v54 = vmul.f32 %v1875_v53, %v1300_v52  ;;  %vm1307_vm15 = vweird.f32 %v1875_v53  ;;  %v1541_v52 = vld [vmem:[#allocation2 + $0x18] sm:$0xff] }
0x1d7d   :  { %vm1308_vm2 = vmor %vm1306_vm1, %vm1307_vm15 }
0x1d7e   :  { %v1303_v55 = vsub.f32 1.0, %v1302_v54 }
0x1d80   :  { %v1304_v57 = vmul.f32 %v1875_v53, %v1303_v55 }
0x1d82   :  { %v1305_v63 = vadd.f32 %v1875_v53, %v1304_v57 }
0x1d84   :  { %v1309_v48 = vsel %vm1308_vm2, %v1875_v53, %v1305_v63 }
0x1d85   :  { %v1314_v49 = vsel %vm1311_vm3, %v1313_v0, %v1309_v48 }
0x1d86   :  { %v1316_v39 = vmul.f32 2.0, %v1314_v49  ;;  %v1318_v51 = vmul.f32 %v1314_v49, %v1262_v10 }
0x1d88   :  { %v1716_v8 = vadd.f32 -1.0, %v1316_v39 }
0x1d8a   :  { %1320 = vrot.lane.b32.xlu2 %v1716_v8, %s1954_s12 }
0x1de4   :  { %v1321_v50 = vpop.permute.xlu2 %1320 }
0x1de5   :  { %v1323_v1 = vmul.f32 %v1321_v50, %v1314_v49 }
0x1de7   :  { %1325 = vrot.lane.b32.xlu1 %v1323_v1, %s1956_s22 }
0x1e59   :  { %v1326_v3 = vpop.permute.xlu1 %1325 }
0x1e5a   :  { %v2329_v4 = vadd.f32 %v1326_v3, %v1318_v51 }
0x1e5c   :  { %1876 = vtanh.f32 %v2329_v4 }
0x1e62   :  { %v1877_v5 = vpop.eup %1876 }
0x1e63   :  { %1331 = vrot.lane.b32.xlu0 %v1877_v5, %s1954_s12 }
0x1ed5   :  { %v1332_v11 = vpop.permute.xlu0 %1331 }
0x1ed6   :  { %v1334_v9 = vmul.f32 %v1332_v11, %v1314_v49 }
0x1ed8   :  { %1336 = vrot.lane.b32.xlu2 %v1334_v9, %s1956_s22 }
0x1f32   :  { %v1337_v26 = vpop.permute.xlu2 %1336 }
0x1f33   :  { %1339 = vst.msk [vmem:[#allocation2 + $0x20] sm:$0xff] %vm557_vm8, %v1337_v26  ;;  %1717 = vmatmul.msk.f32.vlgmr.msra.gmra.mxu1 %vm557_vm8, %v1337_v26 }
0x1f3a   :  { %v1542_v53 = vld [vmem:[#allocation2 + $0x20] sm:$0xff] }
0x1f3b   :  { %1726 = vmatmul.msk.f32.vlgmr.msrb.gmra.mxu1 %vm557_vm8, %v1538_v18 }
0x1f43   :  { %1727 = vmatmul.msk.f32.gmra.mxu1 %vm557_vm8, %v1539_v58 }
0x1f4b   :  { %1728 = vmatmul.msk.f32.gmra.mxu1 %vm557_vm8, %v1540_v19 }
0x1fb0   :  { %v1359_v20 = vpop.f32.mrf.mxu1 }
0x1fb1   :  { %v1362_v21 = vadd.f32 %v1359_v20, %v2205_v61 }
0x1fb3   :  { %v1718_v22 = vmul.f32 -1.442695, %v1362_v21 }
0x1fb5   :  { %1878 = vpow2.f32 %v1718_v22 }
0x1fb8   :  { %v1595_v24 = vpop.f32.mrf.mxu1 }
0x1fb9   :  { %v1596_v27 = vadd.f32 %v2355_v23, %v1595_v24 }
0x1fbb   :  { %v1879_v28 = vpop.eup %1878  ;;  %1620 = vst.msk [vmem:[%s2437_s6] sm:$0xff] %vm1619_vm4, %v1596_v27 }
0x1fbc   :  { %v1366_v29 = vadd.f32 1.0, %v1879_v28 }
0x1fbe   :  { %1880 = vrcp.f32 %v1366_v29  ;;  %v1378_v12 = vand.u32 2147483648, %v1366_v29  ;;  %v1376_v38 = vand.u32 2147483647, %v1366_v29  ;;  %vm1372_vm6 = vweird.f32 %v1366_v29 }
0x1fc0   :  { %v1598_v61 = vpop.f32.mrf.mxu1  ;;  %v1379_v40 = vor.u32 1.1754944e-38, %v1378_v12  ;;  %vm1377_vm9 = vcmp.eq.f32.partialorder %v1376_v38, 8.507059e+37 }
0x1fc1   :  { %v1599_v30 = vadd.f32 %v2355_v23, %v1598_v61 }
0x1fc3   :  { %1621 = vst.msk [vmem:[%s2437_s6 + $0x8] sm:$0xff] %vm1619_vm4, %v1599_v30 }
0x1fc4   :  { %v1881_v31 = vpop.eup %1880 }
0x1fc5   :  { %v1368_v34 = vmul.f32 %v1881_v31, %v1366_v29  ;;  %vm1373_vm5 = vweird.f32 %v1881_v31 }
0x1fc6   :  { %vm1374_vm7 = vmor %vm1372_vm6, %vm1373_vm5 }
0x1fc7   :  { %v1369_v32 = vsub.f32 1.0, %v1368_v34 }
0x1fc8   :  { %v1601_v35 = vpop.f32.mrf.mxu1 }
0x1fc9   :  { %v1602_v36 = vadd.f32 %v2355_v23, %v1601_v35  ;;  %v1370_v37 = vmul.f32 %v1881_v31, %v1369_v32 }
0x1fcb   :  { %1622 = vst.msk [vmem:[%s2437_s6 + $0x10] sm:$0xff] %vm1619_vm4, %v1602_v36  ;;  %v1371_v25 = vadd.f32 %v1881_v31, %v1370_v37 }
0x1fcd   :  { %v1375_v41 = vsel %vm1374_vm7, %v1881_v31, %v1371_v25 }
0x1fce   :  { %v1380_v6 = vsel %vm1377_vm9, %v1379_v40, %v1375_v41 }
0x1fcf   :  { %v1382_v7 = vmul.f32 2.0, %v1380_v6  ;;  %v1384_v60 = vmul.f32 %v1380_v6, %v2329_v4 }
0x1fd1   :  { %v1719_v2 = vadd.f32 -1.0, %v1382_v7 }
0x1fd3   :  { %1386 = vrot.lane.b32.xlu1 %v1719_v2, %s1954_s12 }
0x2045   :  { %v1387_v10 = vpop.permute.xlu1 %1386 }
0x2046   :  { %v1389_v42 = vmul.f32 %v1387_v10, %v1380_v6 }
0x2048   :  { %1391 = vrot.lane.b32.xlu0 %v1389_v42, %s1956_s22 }
0x20ba   :  { %v1392_v43 = vpop.permute.xlu0 %1391 }
0x20bb   :  { %v1394_v44 = vadd.f32 %v1392_v43, %v1384_v60 }
0x20bd   :  { %1882 = vtanh.f32 %v1394_v44 }
0x20c3   :  { %v1883_v59 = vpop.eup %1882 }
0x20c4   :  { %1397 = vrot.lane.b32.xlu2 %v1883_v59, %s1954_s12 }
0x211e   :  { %v1398_v45 = vpop.permute.xlu2 %1397 }
0x211f   :  { %v1400_v46 = vmul.f32 %v1398_v45, %v1380_v6 }
0x2121   :  { %1402 = vrot.lane.b32.xlu1 %v1400_v46, %s1956_s22 }
0x2193   :  { %v1403_v47 = vpop.permute.xlu1 %1402 }
0x2194   :  { %1405 = vst.msk [vmem:[#allocation2 + $0x28] sm:$0xff] %vm557_vm8, %v1403_v47  ;;  %1720 = vmatmul.msk.f32.vlgmr.msra.gmra.mxu2 %vm557_vm8, %v1403_v47 }
0x219b   :  { %v1543_v54 = vld [vmem:[#allocation2 + $0x28] sm:$0xff] }
0x219c   :  { %1729 = vmatmul.msk.f32.vlgmr.msrb.gmra.mxu2 %vm557_vm8, %v1541_v52 }
0x21a4   :  { %1730 = vmatmul.msk.f32.gmra.mxu2 %vm557_vm8, %v1542_v53 }
0x21ac   :  { %1731 = vmatmul.msk.f32.gmra.mxu2 %vm557_vm8, %v1543_v54 }
0x2217   :  { %v1425_v55 = vpop.f32.mrf.mxu2 }
0x2218   :  { %v1428_v56 = vadd.f32 %v1425_v55, %v2254_v15 }
0x221a   :  { %v1721_v57 = vmul.f32 -1.442695, %v1428_v56 }
0x221c   :  { %1884 = vpow2.f32 %v1721_v57 }
0x221f   :  { %v1604_v62 = vpop.f32.mrf.mxu2 }
0x2220   :  { %v1605_v63 = vadd.f32 %v2355_v23, %v1604_v62 }
0x2222   :  { %v1885_v0 = vpop.eup %1884  ;;  %1623 = vst.msk [vmem:[%s2437_s6 + $0x18] sm:$0xff] %vm1619_vm4, %v1605_v63 }
0x2223   :  { %v1432_v48 = vadd.f32 1.0, %v1885_v0 }
0x2225   :  { %1886 = vrcp.f32 %v1432_v48  ;;  %v1444_v51 = vand.u32 2147483648, %v1432_v48  ;;  %v1442_v5 = vand.u32 2147483647, %v1432_v48  ;;  %vm1438_vm0 = vweird.f32 %v1432_v48 }
0x2227   :  { %v1607_v49 = vpop.f32.mrf.mxu2  ;;  %v1445_v9 = vor.u32 1.1754944e-38, %v1444_v51  ;;  %vm1443_vm12 = vcmp.eq.f32.partialorder %v1442_v5, 8.507059e+37 }
0x2228   :  { %v1608_v39 = vadd.f32 %v2355_v23, %v1607_v49 }
0x222a   :  { %1624 = vst.msk [vmem:[%s2437_s6 + $0x20] sm:$0xff] %vm1619_vm4, %v1608_v39 }
0x222b   :  { %v1887_v15 = vpop.eup %1886 }
0x222c   :  { %v1434_v8 = vmul.f32 %v1887_v15, %v1432_v48  ;;  %vm1439_vm10 = vweird.f32 %v1887_v15 }
0x222d   :  { %vm1440_vm11 = vmor %vm1438_vm0, %vm1439_vm10 }
0x222e   :  { %v1435_v50 = vsub.f32 1.0, %v1434_v8 }
0x222f   :  { %v1610_v1 = vpop.f32.mrf.mxu2 }
0x2230   :  { %v1611_v3 = vadd.f32 %v2355_v23, %v1610_v1  ;;  %v1436_v4 = vmul.f32 %v1887_v15, %v1435_v50 }
0x2232   :  { %1625 = vst.msk [vmem:[%s2437_s6 + $0x28] sm:$0xff] %vm1619_vm4, %v1611_v3  ;;  %v1437_v11 = vadd.f32 %v1887_v15, %v1436_v4 }
0x2234   :  { %v1441_v13 = vsel %vm1440_vm11, %v1887_v15, %v1437_v11 }
0x2235   :  { %v1446_v14 = vsel %vm1443_vm12, %v1445_v9, %v1441_v13 }
0x2236   :  { %v1448_v16 = vmul.f32 2.0, %v1446_v14  ;;  %v1450_v58 = vmul.f32 %v1446_v14, %v1394_v44 }
0x2238   :  { %v1722_v17 = vadd.f32 -1.0, %v1448_v16 }
0x223a   :  { %1452 = vrot.lane.b32.xlu0 %v1722_v17, %s1954_s12 }
0x22ac   :  { %v1453_v26 = vpop.permute.xlu0 %1452 }
0x22ad   :  { %v1455_v18 = vmul.f32 %v1453_v26, %v1446_v14 }
0x22af   :  { %1457 = vrot.lane.b32.xlu2 %v1455_v18, %s1956_s22 }
0x2309   :  { %v1458_v19 = vpop.permute.xlu2 %1457 }
0x230a   :  { %v1460_v20 = vadd.f32 %v1458_v19, %v1450_v58 }
0x230c   :  { %1888 = vtanh.f32 %v1460_v20 }
0x2312   :  { %v1889_v21 = vpop.eup %1888 }
0x2313   :  { %1463 = vrot.lane.b32.xlu1 %v1889_v21, %s1954_s12 }
0x2385   :  { %v1464_v22 = vpop.permute.xlu1 %1463 }
0x2386   :  { %v1466_v24 = vmul.f32 %v1464_v22, %v1446_v14 }
0x2388   :  { %1468 = vrot.lane.b32.xlu0 %v1466_v24, %s1956_s22 }
0x23fa   :  { %v1469_v27 = vpop.permute.xlu0 %1468 }
0x23fb   :  { %1471 = vst.msk [vmem:[#allocation2 + $0x30] sm:$0xff] %vm557_vm8, %v1469_v27  ;;  %1723 = vmatmul.msk.f32.vlgmr.msra.gmra.mxu3 %vm557_vm8, %v1469_v27 }
0x2402   :  { %v1544_v28 = vld [vmem:[#allocation2 + $0x30] sm:$0xff] }
0x2403   :  { %1732 = vmatmul.msk.f32.vlgmr.msrb.gmra.mxu3 %vm557_vm8, %v1544_v28 }
0x247e   :  { %v1491_v29 = vpop.f32.mrf.mxu3 }
0x247f   :  { %v1494_v61 = vadd.f32 %v1491_v29, %v2281_v33 }
0x2481   :  { %v1724_v30 = vmul.f32 -1.442695, %v1494_v61 }
0x2483   :  { %1890 = vpow2.f32 %v1724_v30 }
0x2486   :  { %v1613_v31 = vpop.f32.mrf.mxu3 }
0x2487   :  { %v1614_v34 = vadd.f32 %v2355_v23, %v1613_v31 }
0x2489   :  { %v1891_v32 = vpop.eup %1890  ;;  %1626 = vst.msk [vmem:[%s2437_s6 + $0x30] sm:$0xff] %vm1619_vm4, %v1614_v34 }
0x248a   :  { %v1498_v35 = vadd.f32 1.0, %v1891_v32 }
0x248c   :  { %1892 = vrcp.f32 %v1498_v35  ;;  %v1510_v38 = vand.u32 2147483648, %v1498_v35  ;;  %v1508_v33 = vand.u32 2147483647, %v1498_v35  ;;  %vm1504_vm14 = vweird.f32 %v1498_v35 }
0x248e   :  { %v1511_v41 = vor.u32 1.1754944e-38, %v1510_v38  ;;  %vm1509_vm1 = vcmp.eq.f32.partialorder %v1508_v33, 8.507059e+37 }
0x2492   :  { %v1893_v12 = vpop.eup %1892 }
0x2493   :  { %v1500_v36 = vmul.f32 %v1893_v12, %v1498_v35  ;;  %vm1505_vm13 = vweird.f32 %v1893_v12 }
0x2494   :  { %vm1506_vm15 = vmor %vm1504_vm14, %vm1505_vm13 }
0x2495   :  { %v1501_v37 = vsub.f32 1.0, %v1500_v36 }
0x2497   :  { %v1502_v25 = vmul.f32 %v1893_v12, %v1501_v37 }
0x2499   :  { %v1503_v40 = vadd.f32 %v1893_v12, %v1502_v25 }
0x249b   :  { %v1507_v6 = vsel %vm1506_vm15, %v1893_v12, %v1503_v40 }
0x249c   :  { %v1512_v7 = vsel %vm1509_vm1, %v1511_v41, %v1507_v6 }
0x249d   :  { %v1514_v2 = vmul.f32 2.0, %v1512_v7  ;;  %v1516_v43 = vmul.f32 %v1512_v7, %v1460_v20 }
0x249f   :  { %v1725_v10 = vadd.f32 -1.0, %v1514_v2 }
0x24a1   :  { %1518 = vrot.lane.b32.xlu2 %v1725_v10, %s1954_s12 }
0x24fb   :  { %v1519_v42 = vpop.permute.xlu2 %1518 }
0x24fc   :  { %v1521_v60 = vmul.f32 %v1519_v42, %v1512_v7 }
0x24fe   :  { %1523 = vrot.lane.b32.xlu1 %v1521_v60, %s1956_s22 }
0x2570   :  { %v1524_v44 = vpop.permute.xlu1 %1523 }
0x2571   :  { %v1526_v59 = vadd.f32 %v1524_v44, %v1516_v43 }
0x2573   :  { %1894 = vtanh.f32 %v1526_v59  ;;  %1630 = vrot.lane.b32.xlu1 %v1526_v59, %s1955_s13  ;;  %s1641_s13 = sshll.u32 %s1957_s23, 4  ;;  %s1642_s13 = int_to_ptr.vmem [resolvable:$true] %s1641_s13 }
0x2579   :  { %v1895_v45 = vpop.eup %1894 }
0x257a   :  { %1529 = vrot.lane.b32.xlu0 %v1895_v45, %s1954_s12  ;;  %s1643_s12 = sshll.u32 %s2438_s7, 4  ;;  %s1644_s12 = int_to_ptr.hbm [resolvable:$true] %s1643_s12 }
0x25e5   :  { %v1631_v46 = vpop.permute.xlu1 %1630 }
0x25e6   :  { %1633 = vst.msk [vmem:[#allocation5] sm:$0xff] %vm557_vm8, %v1631_v46 }
0x25e7   :  { %1657 = dma.vmem_to_hbm [thread:$0]  %s1653_s25, 128, %s1655_s27, [#allocation6]  }
0x25ec   :  { %v1530_v47 = vpop.permute.xlu0 %1529 }
0x25ed   :  { %v1532_v52 = vmul.f32 %v1530_v47, %v1512_v7 }
0x25ef   :  { %1534 = vrot.lane.b32.xlu2 %v1532_v52, %s1956_s22 }
0x2649   :  { %v1535_v53 = vpop.permute.xlu2 %1534 }
0x264a   :  { %1537 = vst.msk [vmem:[#allocation2 + $0x38] sm:$0xff] %vm557_vm8, %v1535_v53 }
0x264b   :  { %1628 = vst.msk [vmem:[#allocation3] sm:$0xff] %vm557_vm8, %v1535_v53 }
0x264c   :  { %1646 = dma.vmem_to_hbm [thread:$0]  %s1642_s13, 128, %s1644_s12, [#allocation4]  }
0x2651   :  { %v1545_v54 = vld [vmem:[#allocation2 + $0x38] sm:$0xff] }
0x2652   :  { %1733 = vmatmul.msk.f32.gmra.mxu3 %vm557_vm8, %v1545_v54 }
0x26d5   :  { %v1616_v55 = vpop.f32.mrf.mxu3 }
0x26d6   :  { %v1617_v56 = vadd.f32 %v2355_v23, %v1616_v55 }
0x26d8   :  { %1627 = vst.msk [vmem:[%s2437_s6 + $0x38] sm:$0xff] %vm1619_vm4, %v1617_v56 }
0x26d9   :  { %1949 = dma.done.wait [#allocation4], 128  }
0x26da   :  { %1950 = vsyncadd [#allocation4], 4294967168 }
0x26db   :  { %1951 = dma.done.wait [#allocation6], 128  }
0x26dc   :  { %1952 = vsyncadd [#allocation6], 4294967168 }
0x26dd   :  { %1668 = vsyncpa [#allocation4], 1 }
0x26de   :  { %1669 = vsyncpa [#allocation6], 1 }

</bundles_post_ra>
